<compile_context>
chip_gen: v7x
topology: tpu7x:2x2x1
jax: 0.10.0
libtpu: 0.0.40
codegen_flags: <defaults>
</compile_context>

<pallas_src>
import jax
import jax.numpy as jnp
from jax import lax
from jax.experimental import pallas as pl
from jax.experimental.pallas import tpu as pltpu

N_ATOM_CLASSES = 118 + 1   # F.one_hot(x[:, 0], 119)
N_BOND_CLASSES = 21 + 1    # F.one_hot(edge_attr[:, 0], 22)
BN_EPS = 1e-5
OUT_PAD = 128              # lane-dense padded width of the scalar head output


# ---------------------------------------------------------------------------
# Fused Pallas kernel
# ---------------------------------------------------------------------------
def fused_gnn_kernel(x_ref, e_ref, src_ref, idx_ref, vec_ref,
                     w_edge_ref, w_mlp_ref, w_head_ref, out_ref):
    N, xw = x_ref.shape                      # raw node feats  [N, 10]
    E, ew = e_ref.shape                      # raw edge feats  [E, 11]
    Bp = out_ref.shape[0]                    # padded graph count (multiple of 8)
    L, D, _ = w_mlp_ref.shape                # layers, node width (128)
    De = w_edge_ref.shape[0]                 # edge width after one-hot (32)
    emb = w_head_ref.shape[0] - D            # head hidden width (64)
    n_atom = D - (xw - 1)                    # 119
    n_bond = De - (ew - 1)                   # 22

    # row indices into the packed [4L+6, 1, D] vector slab
    R_BE, R_BM, R_BNS, R_BNB = 0, L, 2 * L, 3 * L
    R_BN1S, R_BN1B, R_B1 = 4 * L, 4 * L + 1, 4 * L + 2
    R_BN2S, R_BN2B, R_B2 = 4 * L + 3, 4 * L + 4, 4 * L + 5

    # ---- in-kernel categorical one-hot + feature assembly (no HBM round trip) --
    x_cat = x_ref[:, 0:1].astype(jnp.int32)                                 # [N, 1]
    x_oh = (lax.broadcasted_iota(jnp.int32, (N, D), 1) == x_cat).astype(jnp.float32)
    # 0/1 selection matrix: drops the categorical column, places continuous
    # columns at lanes n_atom..D-1 (avoids any unaligned lane slicing).
    sel_n = ((lax.broadcasted_iota(jnp.int32, (xw, D), 1)
              == (n_atom - 1 + lax.broadcasted_iota(jnp.int32, (xw, D), 0)))
             & (lax.broadcasted_iota(jnp.int32, (xw, D), 0) > 0)).astype(jnp.bfloat16)
    h = x_oh + jnp.dot(x_ref[...].astype(jnp.bfloat16), sel_n,
                       preferred_element_type=jnp.float32)                  # [N, D] f32

    e_cat = e_ref[:, 0:1].astype(jnp.int32)                                 # [E, 1]
    e_oh = (lax.broadcasted_iota(jnp.int32, (E, De), 1) == e_cat).astype(jnp.float32)
    sel_e = ((lax.broadcasted_iota(jnp.int32, (ew, De), 1)
              == (n_bond - 1 + lax.broadcasted_iota(jnp.int32, (ew, De), 0)))
             & (lax.broadcasted_iota(jnp.int32, (ew, De), 0) > 0)).astype(jnp.bfloat16)
    ef = (e_oh + jnp.dot(e_ref[...].astype(jnp.bfloat16), sel_e,
                         preferred_element_type=jnp.float32)).astype(jnp.bfloat16)

    # ---- graph structure as 0/1 matrices, built in the orientation the MXU wants
    dst = idx_ref[:, 0:E]                                                   # [1, E]
    bat = idx_ref[:, E:E + N]                                               # [1, N]
    src_oh = (lax.broadcasted_iota(jnp.int32, (E, N), 1)
              == src_ref[...]).astype(jnp.bfloat16)                         # gather  [E, N]
    dst_ohT = (lax.broadcasted_iota(jnp.int32, (N, E), 0)
               == dst).astype(jnp.bfloat16)                                 # scatter [N, E] (pre-transposed)
    poolT = (lax.broadcasted_iota(jnp.int32, (Bp, N), 0)
             == bat).astype(jnp.bfloat16)                                   # add-pool [Bp, N]

    # ---- hoisted per-layer edge projections: one [E, De] @ [De, L*D] -----------
    e_all = jnp.dot(ef, w_edge_ref[...], preferred_element_type=jnp.float32)

    for l in range(L):                                                      # static unroll
        h_bf = h.astype(jnp.bfloat16)
        # gather source node features: x_j = src_onehot @ h
        xj = jnp.dot(src_oh, h_bf, preferred_element_type=jnp.float32)      # [E, D]
        # message = relu(x_j + lin_l(edge_attr))
        msg = jnp.maximum(xj + e_all[:, l * D:(l + 1) * D] + vec_ref[R_BE + l], 0.0)
        # scatter-add to destinations (MXU-native: K = E contraction)
        agg = jnp.dot(dst_ohT, msg.astype(jnp.bfloat16),
                      preferred_element_type=jnp.float32)                   # [N, D]
        # (1 + eps) * x_i + agg (eps = 0), then GIN mlp (single Linear)
        h = h + agg
        h = jnp.dot(h.astype(jnp.bfloat16), w_mlp_ref[l],
                    preferred_element_type=jnp.float32) + vec_ref[R_BM + l]
        # folded eval-mode BatchNorm, ReLU; Dropout = identity
        h = h * vec_ref[R_BNS + l] + vec_ref[R_BNB + l]
        h = jnp.maximum(h, 0.0)

    # ---- global_add_pool -> BN -> Linear -> ReLU -> BN -> Linear(1, lane-padded)
    g = jnp.dot(poolT, h.astype(jnp.bfloat16),
                preferred_element_type=jnp.float32)                         # [Bp, D]
    g = g * vec_ref[R_BN1S] + vec_ref[R_BN1B]
    g = jnp.dot(g.astype(jnp.bfloat16), w_head_ref[0:D, 0:emb],
                preferred_element_type=jnp.float32) + vec_ref[R_B1][:, 0:emb]
    g = jnp.maximum(g, 0.0)
    g = g * vec_ref[R_BN2S][:, 0:emb] + vec_ref[R_BN2B][:, 0:emb]
    out_ref[...] = jnp.dot(g.astype(jnp.bfloat16), w_head_ref[D:D + emb, :],
                           preferred_element_type=jnp.float32) + vec_ref[R_B2]


# ---------------------------------------------------------------------------
# Wrapper
# ---------------------------------------------------------------------------
def my_final_network(x, edge_index, edge_attr, batch, packed, num_graphs):
    """Forward pass matching MyFinalNetwork.forward (pooling_method='add', eval)."""
    x = x.astype(jnp.float32)
    edge_attr = edge_attr.astype(jnp.float32)
    N = x.shape[0]
    E = edge_attr.shape[0]

    src = edge_index[0].astype(jnp.int32)[:, None]                      # [E, 1] (row bcast)
    idx = jnp.concatenate([edge_index[1].astype(jnp.int32)[None, :],    # [1, E] lane-dense
                           batch.astype(jnp.int32)[None, :]], axis=1)   # [1, E+N]

    Bp = max(8, ((num_graphs + 7) // 8) * 8)                            # sublane-pad graphs

    L, D, _ = packed["w_mlp"].shape
    De = packed["w_edge"].shape[0]
    emb = packed["w_head"].shape[0] - D
    flops = 2 * (N * x.shape[1] * D + E * edge_attr.shape[1] * De + E * De * L * D
                 + L * (2 * E * N * D + N * D * D)
                 + Bp * N * D + Bp * D * emb + Bp * emb * OUT_PAD)
    bytes_accessed = (4 * (x.size + edge_attr.size + src.size + idx.size
                           + packed["vec"].size)
                      + 2 * (packed["w_edge"].size + packed["w_mlp"].size
                             + packed["w_head"].size)
                      + 4 * Bp * OUT_PAD)

    vmem = pl.BlockSpec(memory_space=pltpu.MemorySpace.VMEM)
    out_pad = pl.pallas_call(
        fused_gnn_kernel,
        out_shape=jax.ShapeDtypeStruct((Bp, OUT_PAD), jnp.float32),
        in_specs=[vmem] * 8,
        out_specs=vmem,
        cost_estimate=pl.CostEstimate(flops=int(flops), transcendentals=0,
                                      bytes_accessed=int(bytes_accessed)),
    )(x, edge_attr, src, idx,
      packed["vec"], packed["w_edge"], packed["w_mlp"], packed["w_head"])
    return out_pad[:num_graphs, :1]                                     # [B, 1]


# ---------------------------------------------------------------------------
# Deterministic parameter init (synthetic weights, shapes from __init__)
# ---------------------------------------------------------------------------
def _linear(key, fan_in, fan_out):
    kw, kb = jax.random.split(key)
    bound = 1.0 / float(fan_in) ** 0.5
    w = jax.random.uniform(kw, (fan_in, fan_out), jnp.float32, -bound, bound)
    b = jax.random.uniform(kb, (1, fan_out), jnp.float32, -bound, bound)
    return w, b


def _bn_folded(key, dim):
    kg, kb, km, kv = jax.random.split(key, 4)
    gamma = 1.0 + 0.1 * jax.random.normal(kg, (1, dim), jnp.float32)
    beta = 0.1 * jax.random.normal(kb, (1, dim), jnp.float32)
    r_mean = 0.1 * jax.random.normal(km, (1, dim), jnp.float32)
    r_var = 1.0 + 0.1 * jax.random.uniform(kv, (1, dim), jnp.float32)
    scale = gamma / jnp.sqrt(r_var + BN_EPS)
    shift = beta - r_mean * scale
    return scale, shift


def init_params(key, node_dim_full, edge_dim_full, embedding_dim, num_layers=3):
    keys = jax.random.split(key, num_layers + 1)
    gnn = []
    for li in range(num_layers):
        k1, k2, k3 = jax.random.split(keys[li], 3)
        w_edge, b_edge = _linear(k1, edge_dim_full, node_dim_full)   # GINEConv.lin
        w_mlp, b_mlp = _linear(k2, node_dim_full, node_dim_full)     # GIN mlp (1 layer)
        bn_s, bn_b = _bn_folded(k3, node_dim_full)                   # BatchNorm1d
        gnn.append(dict(w_edge=w_edge, b_edge=b_edge, w_mlp=w_mlp, b_mlp=b_mlp,
                        bn_scale=bn_s, bn_shift=bn_b))
    kh1, kh2, kh3, kh4 = jax.random.split(keys[-1], 4)
    bn1_s, bn1_b = _bn_folded(kh1, node_dim_full)
    w1, b1 = _linear(kh2, node_dim_full, embedding_dim)
    bn2_s, bn2_b = _bn_folded(kh3, embedding_dim)
    w2, b2 = _linear(kh4, embedding_dim, 1)
    head = dict(bn1_scale=bn1_s, bn1_shift=bn1_b, w1=w1, b1=b1,
                bn2_scale=bn2_s, bn2_shift=bn2_b, w2=w2, b2=b2)
    return dict(gnn=gnn, head=head)


def pack_params(params):
    """Coalesce all weights into 4 slabs: vec [4L+6,1,D] f32, w_edge, w_mlp, w_head bf16."""
    gnn, head = params["gnn"], params["head"]
    L = len(gnn)
    De, D = gnn[0]["w_edge"].shape
    emb = head["w1"].shape[1]
    assert D == OUT_PAD, "vector/head slab layout assumes node_dim == OUT_PAD"
    assert emb <= D

    def row(v):                                   # [1, k] -> [1, 1, D] zero-padded
        k = v.shape[1]
        return jnp.zeros((1, 1, D), jnp.float32).at[0, 0, :k].set(
            v[0].astype(jnp.float32))

    rows = ([row(p["b_edge"]) for p in gnn]
            + [row(p["b_mlp"]) for p in gnn]
            + [row(p["bn_scale"]) for p in gnn]
            + [row(p["bn_shift"]) for p in gnn]
            + [row(head["bn1_scale"]), row(head["bn1_shift"]), row(head["b1"]),
               row(head["bn2_scale"]), row(head["bn2_shift"]), row(head["b2"])])
    vec = jnp.concatenate(rows, axis=0)                               # [4L+6, 1, D] f32

    w_edge = jnp.concatenate([p["w_edge"] for p in gnn],
                             axis=1).astype(jnp.bfloat16)             # [De, L*D]
    w_mlp = jnp.stack([p["w_mlp"] for p in gnn]).astype(jnp.bfloat16) # [L, D, D]
    w1p = jnp.zeros((D, D), jnp.float32).at[:, :emb].set(head["w1"])
    w2p = jnp.zeros((emb, OUT_PAD), jnp.float32).at[:, :1].set(head["w2"])
    w_head = jnp.concatenate([w1p, w2p], axis=0).astype(jnp.bfloat16) # [D+emb, 128]
    return dict(vec=vec, w_edge=w_edge, w_mlp=w_mlp, w_head=w_head)


# ---------------------------------------------------------------------------
if __name__ == "__main__":
    key = jax.random.PRNGKey(0)
    N, E, B = 64, 128, 4                 # nodes, edges, graphs
    node_dim_in, edge_dim_in = 10, 11    # raw feature widths (col 0 categorical)
    embedding_dim = 64
    D = node_dim_in - 1 + N_ATOM_CLASSES     # 128 (node width after one-hot)
    De = edge_dim_in - 1 + N_BOND_CLASSES    # 32  (edge width after one-hot)

    ks = jax.random.split(key, 7)
    x_type = jax.random.randint(ks[0], (N,), 0, N_ATOM_CLASSES)
    x_rest = jax.random.normal(ks[1], (N, node_dim_in - 1), jnp.float32)
    x_raw = jnp.concatenate([x_type[:, None].astype(jnp.float32), x_rest], axis=1)

    e_type = jax.random.randint(ks[2], (E,), 0, N_BOND_CLASSES)
    e_rest = jax.random.normal(ks[3], (E, edge_dim_in - 1), jnp.float32)
    edge_attr_raw = jnp.concatenate([e_type[:, None].astype(jnp.float32), e_rest],
                                    axis=1)

    edge_index = jnp.stack([jax.random.randint(ks[4], (E,), 0, N),
                            jax.random.randint(ks[5], (E,), 0, N)])   # [2, E]
    batch = jnp.repeat(jnp.arange(B, dtype=jnp.int32), N // B)        # [N]

    params = init_params(ks[6], D, De, embedding_dim, num_layers=3)
    packed = pack_params(params)

    fwd = jax.jit(lambda a, b, c, d: my_final_network(a, b, c, d, packed, B))
    out = fwd(x_raw, edge_index, edge_attr_raw, batch)
    jax.block_until_ready(out)
    assert out.shape == (B, 1) and out.dtype == jnp.float32
    assert bool(jnp.all(jnp.isfinite(out)))
    print("KERNEL_OK")
</pallas_src>

<mosaic_0001>
module attributes {stable_mosaic.version = 11 : i64} {
  func.func @fused_gnn_kernel(%arg0: memref<64x10xf32, #tpu.memory_space<vmem>>, %arg1: memref<128x11xf32, #tpu.memory_space<vmem>>, %arg2: memref<128x1xi32, #tpu.memory_space<vmem>>, %arg3: memref<1x192xi32, #tpu.memory_space<vmem>>, %arg4: memref<18x1x128xf32, #tpu.memory_space<vmem>>, %arg5: memref<32x384xbf16, #tpu.memory_space<vmem>>, %arg6: memref<3x128x128xbf16, #tpu.memory_space<vmem>>, %arg7: memref<192x128xbf16, #tpu.memory_space<vmem>>, %arg8: memref<8x128xf32, #tpu.memory_space<vmem>>) attributes {dimension_semantics = [], scalar_prefetch = 0 : i64, scratch_operands = 0 : i64, tpu.core_type = #tpu.core_type<tc>} {
    %c0 = arith.constant 0 : index
    %c0_0 = arith.constant 0 : index
    %0 = vector.load %arg0[%c0, %c0_0] : memref<64x10xf32, #tpu.memory_space<vmem>>, vector<64x1xf32>
    %1 = arith.fptosi %0 : vector<64x1xf32> to vector<64x1xi32>
    %2 = tpu.iota {dimensions = array<i32: 1>} : vector<64x128xi32>
    %3 = vector.broadcast %1 : vector<64x1xi32> to vector<64x128xi32>
    %4 = arith.cmpi eq, %2, %3 : vector<64x128xi32>
    %5 = arith.extui %4 : vector<64x128xi1> to vector<64x128xi32>
    %6 = arith.sitofp %5 : vector<64x128xi32> to vector<64x128xf32>
    %7 = tpu.iota {dimensions = array<i32: 1>} : vector<10x128xi32>
    %8 = tpu.iota {dimensions = array<i32: 0>} : vector<10x128xi32>
    %c118_i32 = arith.constant 118 : i32
    %9 = vector.broadcast %c118_i32 : i32 to vector<10x128xi32>
    %10 = arith.addi %9, %8 : vector<10x128xi32>
    %11 = arith.cmpi eq, %7, %10 : vector<10x128xi32>
    %12 = tpu.iota {dimensions = array<i32: 0>} : vector<10x128xi32>
    %c0_i32 = arith.constant 0 : i32
    %13 = vector.broadcast %c0_i32 : i32 to vector<10x128xi32>
    %14 = arith.cmpi sgt, %12, %13 : vector<10x128xi32>
    %15 = arith.andi %11, %14 : vector<10x128xi1>
    %16 = arith.extui %15 : vector<10x128xi1> to vector<10x128xi32>
    %17 = arith.sitofp %16 : vector<10x128xi32> to vector<10x128xf32>
    %18 = arith.truncf %17 : vector<10x128xf32> to vector<10x128xbf16>
    %c0_1 = arith.constant 0 : index
    %c0_2 = arith.constant 0 : index
    %19 = vector.load %arg0[%c0_1, %c0_2] : memref<64x10xf32, #tpu.memory_space<vmem>>, vector<64x10xf32>
    %20 = arith.truncf %19 : vector<64x10xf32> to vector<64x10xbf16>
    %cst = arith.constant dense<0.000000e+00> : vector<64x128xf32>
    %21 = tpu.matmul %20, %18, %cst {dimension_numbers = #tpu.dot_dimension_numbers<[1], [0], [0], [1], [0, 0, 1, 1], [], []>} : vector<64x10xbf16>, vector<10x128xbf16>, vector<64x128xf32> -> vector<64x128xf32>
    %22 = arith.addf %6, %21 : vector<64x128xf32>
    %c0_3 = arith.constant 0 : index
    %c0_4 = arith.constant 0 : index
    %23 = vector.load %arg1[%c0_3, %c0_4] : memref<128x11xf32, #tpu.memory_space<vmem>>, vector<128x1xf32>
    %24 = arith.fptosi %23 : vector<128x1xf32> to vector<128x1xi32>
    %25 = tpu.iota {dimensions = array<i32: 1>} : vector<128x32xi32>
    %26 = vector.broadcast %24 : vector<128x1xi32> to vector<128x32xi32>
    %27 = arith.cmpi eq, %25, %26 : vector<128x32xi32>
    %28 = arith.extui %27 : vector<128x32xi1> to vector<128x32xi32>
    %29 = arith.sitofp %28 : vector<128x32xi32> to vector<128x32xf32>
    %30 = tpu.iota {dimensions = array<i32: 1>} : vector<11x32xi32>
    %31 = tpu.iota {dimensions = array<i32: 0>} : vector<11x32xi32>
    %c21_i32 = arith.constant 21 : i32
    %32 = vector.broadcast %c21_i32 : i32 to vector<11x32xi32>
    %33 = arith.addi %32, %31 : vector<11x32xi32>
    %34 = arith.cmpi eq, %30, %33 : vector<11x32xi32>
    %35 = tpu.iota {dimensions = array<i32: 0>} : vector<11x32xi32>
    %c0_i32_5 = arith.constant 0 : i32
    %36 = vector.broadcast %c0_i32_5 : i32 to vector<11x32xi32>
    %37 = arith.cmpi sgt, %35, %36 : vector<11x32xi32>
    %38 = arith.andi %34, %37 : vector<11x32xi1>
    %39 = arith.extui %38 : vector<11x32xi1> to vector<11x32xi32>
    %40 = arith.sitofp %39 : vector<11x32xi32> to vector<11x32xf32>
    %41 = arith.truncf %40 : vector<11x32xf32> to vector<11x32xbf16>
    %c0_6 = arith.constant 0 : index
    %c0_7 = arith.constant 0 : index
    %42 = vector.load %arg1[%c0_6, %c0_7] : memref<128x11xf32, #tpu.memory_space<vmem>>, vector<128x11xf32>
    %43 = arith.truncf %42 : vector<128x11xf32> to vector<128x11xbf16>
    %cst_8 = arith.constant dense<0.000000e+00> : vector<128x32xf32>
    %44 = tpu.matmul %43, %41, %cst_8 {dimension_numbers = #tpu.dot_dimension_numbers<[1], [0], [0], [1], [0, 0, 1, 1], [], []>} : vector<128x11xbf16>, vector<11x32xbf16>, vector<128x32xf32> -> vector<128x32xf32>
    %45 = arith.addf %29, %44 : vector<128x32xf32>
    %46 = arith.truncf %45 : vector<128x32xf32> to vector<128x32xbf16>
    %c0_9 = arith.constant 0 : index
    %c0_10 = arith.constant 0 : index
    %47 = vector.load %arg3[%c0_9, %c0_10] : memref<1x192xi32, #tpu.memory_space<vmem>>, vector<1x128xi32>
    %c0_11 = arith.constant 0 : index
    %c128 = arith.constant 128 : index
    %48 = vector.load %arg3[%c0_11, %c128] : memref<1x192xi32, #tpu.memory_space<vmem>>, vector<1x64xi32>
    %49 = tpu.iota {dimensions = array<i32: 1>} : vector<128x64xi32>
    %c0_12 = arith.constant 0 : index
    %c0_13 = arith.constant 0 : index
    %50 = vector.load %arg2[%c0_12, %c0_13] : memref<128x1xi32, #tpu.memory_space<vmem>>, vector<128x1xi32>
    %51 = vector.broadcast %50 : vector<128x1xi32> to vector<128x64xi32>
    %52 = arith.cmpi eq, %49, %51 : vector<128x64xi32>
    %53 = arith.extui %52 : vector<128x64xi1> to vector<128x64xi32>
    %54 = arith.sitofp %53 : vector<128x64xi32> to vector<128x64xf32>
    %55 = arith.truncf %54 : vector<128x64xf32> to vector<128x64xbf16>
    %56 = tpu.iota {dimensions = array<i32: 0>} : vector<64x128xi32>
    %57 = vector.broadcast %47 : vector<1x128xi32> to vector<64x128xi32>
    %58 = arith.cmpi eq, %56, %57 : vector<64x128xi32>
    %59 = arith.extui %58 : vector<64x128xi1> to vector<64x128xi32>
    %60 = arith.sitofp %59 : vector<64x128xi32> to vector<64x128xf32>
    %61 = arith.truncf %60 : vector<64x128xf32> to vector<64x128xbf16>
    %62 = tpu.iota {dimensions = array<i32: 0>} : vector<8x64xi32>
    %63 = vector.broadcast %48 : vector<1x64xi32> to vector<8x64xi32>
    %64 = arith.cmpi eq, %62, %63 : vector<8x64xi32>
    %65 = arith.extui %64 : vector<8x64xi1> to vector<8x64xi32>
    %66 = arith.sitofp %65 : vector<8x64xi32> to vector<8x64xf32>
    %67 = arith.truncf %66 : vector<8x64xf32> to vector<8x64xbf16>
    %c0_14 = arith.constant 0 : index
    %c0_15 = arith.constant 0 : index
    %68 = vector.load %arg5[%c0_14, %c0_15] : memref<32x384xbf16, #tpu.memory_space<vmem>>, vector<32x384xbf16>
    %cst_16 = arith.constant dense<0.000000e+00> : vector<128x384xf32>
    %69 = tpu.matmul %46, %68, %cst_16 {dimension_numbers = #tpu.dot_dimension_numbers<[1], [0], [0], [1], [0, 0, 1, 1], [], []>} : vector<128x32xbf16>, vector<32x384xbf16>, vector<128x384xf32> -> vector<128x384xf32>
    %70 = arith.truncf %22 : vector<64x128xf32> to vector<64x128xbf16>
    %cst_17 = arith.constant dense<0.000000e+00> : vector<128x128xf32>
    %71 = tpu.matmul %55, %70, %cst_17 {dimension_numbers = #tpu.dot_dimension_numbers<[1], [0], [0], [1], [0, 0, 1, 1], [], []>} : vector<128x64xbf16>, vector<64x128xbf16>, vector<128x128xf32> -> vector<128x128xf32>
    %72 = vector.extract_strided_slice %69 {offsets = [0, 0], sizes = [128, 128], strides = [1, 1]} : vector<128x384xf32> to vector<128x128xf32>
    %73 = arith.addf %71, %72 : vector<128x128xf32>
    %c0_18 = arith.constant 0 : index
    %c0_19 = arith.constant 0 : index
    %c0_20 = arith.constant 0 : index
    %74 = vector.load %arg4[%c0_18, %c0_19, %c0_20] : memref<18x1x128xf32, #tpu.memory_space<vmem>>, vector<1x1x128xf32>
    %75 = vector.shape_cast %74 : vector<1x1x128xf32> to vector<1x128xf32>
    %76 = vector.broadcast %75 : vector<1x128xf32> to vector<128x128xf32>
    %77 = arith.addf %73, %76 : vector<128x128xf32>
    %cst_21 = arith.constant 0.000000e+00 : f32
    %78 = vector.broadcast %cst_21 : f32 to vector<128x128xf32>
    %79 = arith.maximumf %77, %78 : vector<128x128xf32>
    %80 = arith.truncf %79 : vector<128x128xf32> to vector<128x128xbf16>
    %cst_22 = arith.constant dense<0.000000e+00> : vector<64x128xf32>
    %81 = tpu.matmul %61, %80, %cst_22 {dimension_numbers = #tpu.dot_dimension_numbers<[1], [0], [0], [1], [0, 0, 1, 1], [], []>} : vector<64x128xbf16>, vector<128x128xbf16>, vector<64x128xf32> -> vector<64x128xf32>
    %82 = arith.addf %22, %81 : vector<64x128xf32>
    %83 = arith.truncf %82 : vector<64x128xf32> to vector<64x128xbf16>
    %c0_23 = arith.constant 0 : index
    %c0_24 = arith.constant 0 : index
    %c0_25 = arith.constant 0 : index
    %84 = vector.load %arg6[%c0_23, %c0_24, %c0_25] : memref<3x128x128xbf16, #tpu.memory_space<vmem>>, vector<1x128x128xbf16>
    %85 = vector.shape_cast %84 : vector<1x128x128xbf16> to vector<128x128xbf16>
    %cst_26 = arith.constant dense<0.000000e+00> : vector<64x128xf32>
    %86 = tpu.matmul %83, %85, %cst_26 {dimension_numbers = #tpu.dot_dimension_numbers<[1], [0], [0], [1], [0, 0, 1, 1], [], []>} : vector<64x128xbf16>, vector<128x128xbf16>, vector<64x128xf32> -> vector<64x128xf32>
    %c3 = arith.constant 3 : index
    %c0_27 = arith.constant 0 : index
    %c0_28 = arith.constant 0 : index
    %87 = vector.load %arg4[%c3, %c0_27, %c0_28] : memref<18x1x128xf32, #tpu.memory_space<vmem>>, vector<1x1x128xf32>
    %88 = vector.shape_cast %87 : vector<1x1x128xf32> to vector<1x128xf32>
    %89 = vector.broadcast %88 : vector<1x128xf32> to vector<64x128xf32>
    %90 = arith.addf %86, %89 : vector<64x128xf32>
    %c6 = arith.constant 6 : index
    %c0_29 = arith.constant 0 : index
    %c0_30 = arith.constant 0 : index
    %91 = vector.load %arg4[%c6, %c0_29, %c0_30] : memref<18x1x128xf32, #tpu.memory_space<vmem>>, vector<1x1x128xf32>
    %92 = vector.shape_cast %91 : vector<1x1x128xf32> to vector<1x128xf32>
    %93 = vector.broadcast %92 : vector<1x128xf32> to vector<64x128xf32>
    %94 = arith.mulf %90, %93 : vector<64x128xf32>
    %c9 = arith.constant 9 : index
    %c0_31 = arith.constant 0 : index
    %c0_32 = arith.constant 0 : index
    %95 = vector.load %arg4[%c9, %c0_31, %c0_32] : memref<18x1x128xf32, #tpu.memory_space<vmem>>, vector<1x1x128xf32>
    %96 = vector.shape_cast %95 : vector<1x1x128xf32> to vector<1x128xf32>
    %97 = vector.broadcast %96 : vector<1x128xf32> to vector<64x128xf32>
    %98 = arith.addf %94, %97 : vector<64x128xf32>
    %cst_33 = arith.constant 0.000000e+00 : f32
    %99 = vector.broadcast %cst_33 : f32 to vector<64x128xf32>
    %100 = arith.maximumf %98, %99 : vector<64x128xf32>
    %101 = arith.truncf %100 : vector<64x128xf32> to vector<64x128xbf16>
    %cst_34 = arith.constant dense<0.000000e+00> : vector<128x128xf32>
    %102 = tpu.matmul %55, %101, %cst_34 {dimension_numbers = #tpu.dot_dimension_numbers<[1], [0], [0], [1], [0, 0, 1, 1], [], []>} : vector<128x64xbf16>, vector<64x128xbf16>, vector<128x128xf32> -> vector<128x128xf32>
    %103 = vector.extract_strided_slice %69 {offsets = [0, 128], sizes = [128, 128], strides = [1, 1]} : vector<128x384xf32> to vector<128x128xf32>
    %104 = arith.addf %102, %103 : vector<128x128xf32>
    %c1 = arith.constant 1 : index
    %c0_35 = arith.constant 0 : index
    %c0_36 = arith.constant 0 : index
    %105 = vector.load %arg4[%c1, %c0_35, %c0_36] : memref<18x1x128xf32, #tpu.memory_space<vmem>>, vector<1x1x128xf32>
    %106 = vector.shape_cast %105 : vector<1x1x128xf32> to vector<1x128xf32>
    %107 = vector.broadcast %106 : vector<1x128xf32> to vector<128x128xf32>
    %108 = arith.addf %104, %107 : vector<128x128xf32>
    %cst_37 = arith.constant 0.000000e+00 : f32
    %109 = vector.broadcast %cst_37 : f32 to vector<128x128xf32>
    %110 = arith.maximumf %108, %109 : vector<128x128xf32>
    %111 = arith.truncf %110 : vector<128x128xf32> to vector<128x128xbf16>
    %cst_38 = arith.constant dense<0.000000e+00> : vector<64x128xf32>
    %112 = tpu.matmul %61, %111, %cst_38 {dimension_numbers = #tpu.dot_dimension_numbers<[1], [0], [0], [1], [0, 0, 1, 1], [], []>} : vector<64x128xbf16>, vector<128x128xbf16>, vector<64x128xf32> -> vector<64x128xf32>
    %113 = arith.addf %100, %112 : vector<64x128xf32>
    %114 = arith.truncf %113 : vector<64x128xf32> to vector<64x128xbf16>
    %c1_39 = arith.constant 1 : index
    %c0_40 = arith.constant 0 : index
    %c0_41 = arith.constant 0 : index
    %115 = vector.load %arg6[%c1_39, %c0_40, %c0_41] : memref<3x128x128xbf16, #tpu.memory_space<vmem>>, vector<1x128x128xbf16>
    %116 = vector.shape_cast %115 : vector<1x128x128xbf16> to vector<128x128xbf16>
    %cst_42 = arith.constant dense<0.000000e+00> : vector<64x128xf32>
    %117 = tpu.matmul %114, %116, %cst_42 {dimension_numbers = #tpu.dot_dimension_numbers<[1], [0], [0], [1], [0, 0, 1, 1], [], []>} : vector<64x128xbf16>, vector<128x128xbf16>, vector<64x128xf32> -> vector<64x128xf32>
    %c4 = arith.constant 4 : index
    %c0_43 = arith.constant 0 : index
    %c0_44 = arith.constant 0 : index
    %118 = vector.load %arg4[%c4, %c0_43, %c0_44] : memref<18x1x128xf32, #tpu.memory_space<vmem>>, vector<1x1x128xf32>
    %119 = vector.shape_cast %118 : vector<1x1x128xf32> to vector<1x128xf32>
    %120 = vector.broadcast %119 : vector<1x128xf32> to vector<64x128xf32>
    %121 = arith.addf %117, %120 : vector<64x128xf32>
    %c7 = arith.constant 7 : index
    %c0_45 = arith.constant 0 : index
    %c0_46 = arith.constant 0 : index
    %122 = vector.load %arg4[%c7, %c0_45, %c0_46] : memref<18x1x128xf32, #tpu.memory_space<vmem>>, vector<1x1x128xf32>
    %123 = vector.shape_cast %122 : vector<1x1x128xf32> to vector<1x128xf32>
    %124 = vector.broadcast %123 : vector<1x128xf32> to vector<64x128xf32>
    %125 = arith.mulf %121, %124 : vector<64x128xf32>
    %c10 = arith.constant 10 : index
    %c0_47 = arith.constant 0 : index
    %c0_48 = arith.constant 0 : index
    %126 = vector.load %arg4[%c10, %c0_47, %c0_48] : memref<18x1x128xf32, #tpu.memory_space<vmem>>, vector<1x1x128xf32>
    %127 = vector.shape_cast %126 : vector<1x1x128xf32> to vector<1x128xf32>
    %128 = vector.broadcast %127 : vector<1x128xf32> to vector<64x128xf32>
    %129 = arith.addf %125, %128 : vector<64x128xf32>
    %cst_49 = arith.constant 0.000000e+00 : f32
    %130 = vector.broadcast %cst_49 : f32 to vector<64x128xf32>
    %131 = arith.maximumf %129, %130 : vector<64x128xf32>
    %132 = arith.truncf %131 : vector<64x128xf32> to vector<64x128xbf16>
    %cst_50 = arith.constant dense<0.000000e+00> : vector<128x128xf32>
    %133 = tpu.matmul %55, %132, %cst_50 {dimension_numbers = #tpu.dot_dimension_numbers<[1], [0], [0], [1], [0, 0, 1, 1], [], []>} : vector<128x64xbf16>, vector<64x128xbf16>, vector<128x128xf32> -> vector<128x128xf32>
    %134 = vector.extract_strided_slice %69 {offsets = [0, 256], sizes = [128, 128], strides = [1, 1]} : vector<128x384xf32> to vector<128x128xf32>
    %135 = arith.addf %133, %134 : vector<128x128xf32>
    %c2 = arith.constant 2 : index
    %c0_51 = arith.constant 0 : index
    %c0_52 = arith.constant 0 : index
    %136 = vector.load %arg4[%c2, %c0_51, %c0_52] : memref<18x1x128xf32, #tpu.memory_space<vmem>>, vector<1x1x128xf32>
    %137 = vector.shape_cast %136 : vector<1x1x128xf32> to vector<1x128xf32>
    %138 = vector.broadcast %137 : vector<1x128xf32> to vector<128x128xf32>
    %139 = arith.addf %135, %138 : vector<128x128xf32>
    %cst_53 = arith.constant 0.000000e+00 : f32
    %140 = vector.broadcast %cst_53 : f32 to vector<128x128xf32>
    %141 = arith.maximumf %139, %140 : vector<128x128xf32>
    %142 = arith.truncf %141 : vector<128x128xf32> to vector<128x128xbf16>
    %cst_54 = arith.constant dense<0.000000e+00> : vector<64x128xf32>
    %143 = tpu.matmul %61, %142, %cst_54 {dimension_numbers = #tpu.dot_dimension_numbers<[1], [0], [0], [1], [0, 0, 1, 1], [], []>} : vector<64x128xbf16>, vector<128x128xbf16>, vector<64x128xf32> -> vector<64x128xf32>
    %144 = arith.addf %131, %143 : vector<64x128xf32>
    %145 = arith.truncf %144 : vector<64x128xf32> to vector<64x128xbf16>
    %c2_55 = arith.constant 2 : index
    %c0_56 = arith.constant 0 : index
    %c0_57 = arith.constant 0 : index
    %146 = vector.load %arg6[%c2_55, %c0_56, %c0_57] : memref<3x128x128xbf16, #tpu.memory_space<vmem>>, vector<1x128x128xbf16>
    %147 = vector.shape_cast %146 : vector<1x128x128xbf16> to vector<128x128xbf16>
    %cst_58 = arith.constant dense<0.000000e+00> : vector<64x128xf32>
    %148 = tpu.matmul %145, %147, %cst_58 {dimension_numbers = #tpu.dot_dimension_numbers<[1], [0], [0], [1], [0, 0, 1, 1], [], []>} : vector<64x128xbf16>, vector<128x128xbf16>, vector<64x128xf32> -> vector<64x128xf32>
    %c5 = arith.constant 5 : index
    %c0_59 = arith.constant 0 : index
    %c0_60 = arith.constant 0 : index
    %149 = vector.load %arg4[%c5, %c0_59, %c0_60] : memref<18x1x128xf32, #tpu.memory_space<vmem>>, vector<1x1x128xf32>
    %150 = vector.shape_cast %149 : vector<1x1x128xf32> to vector<1x128xf32>
    %151 = vector.broadcast %150 : vector<1x128xf32> to vector<64x128xf32>
    %152 = arith.addf %148, %151 : vector<64x128xf32>
    %c8 = arith.constant 8 : index
    %c0_61 = arith.constant 0 : index
    %c0_62 = arith.constant 0 : index
    %153 = vector.load %arg4[%c8, %c0_61, %c0_62] : memref<18x1x128xf32, #tpu.memory_space<vmem>>, vector<1x1x128xf32>
    %154 = vector.shape_cast %153 : vector<1x1x128xf32> to vector<1x128xf32>
    %155 = vector.broadcast %154 : vector<1x128xf32> to vector<64x128xf32>
    %156 = arith.mulf %152, %155 : vector<64x128xf32>
    %c11 = arith.constant 11 : index
    %c0_63 = arith.constant 0 : index
    %c0_64 = arith.constant 0 : index
    %157 = vector.load %arg4[%c11, %c0_63, %c0_64] : memref<18x1x128xf32, #tpu.memory_space<vmem>>, vector<1x1x128xf32>
    %158 = vector.shape_cast %157 : vector<1x1x128xf32> to vector<1x128xf32>
    %159 = vector.broadcast %158 : vector<1x128xf32> to vector<64x128xf32>
    %160 = arith.addf %156, %159 : vector<64x128xf32>
    %cst_65 = arith.constant 0.000000e+00 : f32
    %161 = vector.broadcast %cst_65 : f32 to vector<64x128xf32>
    %162 = arith.maximumf %160, %161 : vector<64x128xf32>
    %163 = arith.truncf %162 : vector<64x128xf32> to vector<64x128xbf16>
    %cst_66 = arith.constant dense<0.000000e+00> : vector<8x128xf32>
    %164 = tpu.matmul %67, %163, %cst_66 {dimension_numbers = #tpu.dot_dimension_numbers<[1], [0], [0], [1], [0, 0, 1, 1], [], []>} : vector<8x64xbf16>, vector<64x128xbf16>, vector<8x128xf32> -> vector<8x128xf32>
    %c12 = arith.constant 12 : index
    %c0_67 = arith.constant 0 : index
    %c0_68 = arith.constant 0 : index
    %165 = vector.load %arg4[%c12, %c0_67, %c0_68] : memref<18x1x128xf32, #tpu.memory_space<vmem>>, vector<1x1x128xf32>
    %166 = vector.shape_cast %165 : vector<1x1x128xf32> to vector<1x128xf32>
    %167 = vector.broadcast %166 : vector<1x128xf32> to vector<8x128xf32>
    %168 = arith.mulf %164, %167 : vector<8x128xf32>
    %c13 = arith.constant 13 : index
    %c0_69 = arith.constant 0 : index
    %c0_70 = arith.constant 0 : index
    %169 = vector.load %arg4[%c13, %c0_69, %c0_70] : memref<18x1x128xf32, #tpu.memory_space<vmem>>, vector<1x1x128xf32>
    %170 = vector.shape_cast %169 : vector<1x1x128xf32> to vector<1x128xf32>
    %171 = vector.broadcast %170 : vector<1x128xf32> to vector<8x128xf32>
    %172 = arith.addf %168, %171 : vector<8x128xf32>
    %173 = arith.truncf %172 : vector<8x128xf32> to vector<8x128xbf16>
    %c0_71 = arith.constant 0 : index
    %c0_72 = arith.constant 0 : index
    %174 = vector.load %arg7[%c0_71, %c0_72] : memref<192x128xbf16, #tpu.memory_space<vmem>>, vector<128x64xbf16>
    %cst_73 = arith.constant dense<0.000000e+00> : vector<8x64xf32>
    %175 = tpu.matmul %173, %174, %cst_73 {dimension_numbers = #tpu.dot_dimension_numbers<[1], [0], [0], [1], [0, 0, 1, 1], [], []>} : vector<8x128xbf16>, vector<128x64xbf16>, vector<8x64xf32> -> vector<8x64xf32>
    %c14 = arith.constant 14 : index
    %c0_74 = arith.constant 0 : index
    %c0_75 = arith.constant 0 : index
    %176 = vector.load %arg4[%c14, %c0_74, %c0_75] : memref<18x1x128xf32, #tpu.memory_space<vmem>>, vector<1x1x128xf32>
    %177 = vector.shape_cast %176 : vector<1x1x128xf32> to vector<1x128xf32>
    %178 = vector.extract_strided_slice %177 {offsets = [0, 0], sizes = [1, 64], strides = [1, 1]} : vector<1x128xf32> to vector<1x64xf32>
    %179 = vector.broadcast %178 : vector<1x64xf32> to vector<8x64xf32>
    %180 = arith.addf %175, %179 : vector<8x64xf32>
    %cst_76 = arith.constant 0.000000e+00 : f32
    %181 = vector.broadcast %cst_76 : f32 to vector<8x64xf32>
    %182 = arith.maximumf %180, %181 : vector<8x64xf32>
    %c15 = arith.constant 15 : index
    %c0_77 = arith.constant 0 : index
    %c0_78 = arith.constant 0 : index
    %183 = vector.load %arg4[%c15, %c0_77, %c0_78] : memref<18x1x128xf32, #tpu.memory_space<vmem>>, vector<1x1x128xf32>
    %184 = vector.shape_cast %183 : vector<1x1x128xf32> to vector<1x128xf32>
    %185 = vector.extract_strided_slice %184 {offsets = [0, 0], sizes = [1, 64], strides = [1, 1]} : vector<1x128xf32> to vector<1x64xf32>
    %186 = vector.broadcast %185 : vector<1x64xf32> to vector<8x64xf32>
    %187 = arith.mulf %182, %186 : vector<8x64xf32>
    %c16 = arith.constant 16 : index
    %c0_79 = arith.constant 0 : index
    %c0_80 = arith.constant 0 : index
    %188 = vector.load %arg4[%c16, %c0_79, %c0_80] : memref<18x1x128xf32, #tpu.memory_space<vmem>>, vector<1x1x128xf32>
    %189 = vector.shape_cast %188 : vector<1x1x128xf32> to vector<1x128xf32>
    %190 = vector.extract_strided_slice %189 {offsets = [0, 0], sizes = [1, 64], strides = [1, 1]} : vector<1x128xf32> to vector<1x64xf32>
    %191 = vector.broadcast %190 : vector<1x64xf32> to vector<8x64xf32>
    %192 = arith.addf %187, %191 : vector<8x64xf32>
    %193 = arith.truncf %192 : vector<8x64xf32> to vector<8x64xbf16>
    %c128_81 = arith.constant 128 : index
    %c0_82 = arith.constant 0 : index
    %194 = vector.load %arg7[%c128_81, %c0_82] : memref<192x128xbf16, #tpu.memory_space<vmem>>, vector<64x128xbf16>
    %cst_83 = arith.constant dense<0.000000e+00> : vector<8x128xf32>
    %195 = tpu.matmul %193, %194, %cst_83 {dimension_numbers = #tpu.dot_dimension_numbers<[1], [0], [0], [1], [0, 0, 1, 1], [], []>} : vector<8x64xbf16>, vector<64x128xbf16>, vector<8x128xf32> -> vector<8x128xf32>
    %c17 = arith.constant 17 : index
    %c0_84 = arith.constant 0 : index
    %c0_85 = arith.constant 0 : index
    %196 = vector.load %arg4[%c17, %c0_84, %c0_85] : memref<18x1x128xf32, #tpu.memory_space<vmem>>, vector<1x1x128xf32>
    %197 = vector.shape_cast %196 : vector<1x1x128xf32> to vector<1x128xf32>
    %198 = vector.broadcast %197 : vector<1x128xf32> to vector<8x128xf32>
    %199 = arith.addf %195, %198 : vector<8x128xf32>
    %c0_86 = arith.constant 0 : index
    %c0_87 = arith.constant 0 : index
    %200 = vector.load %arg8[%c0_86, %c0_87] : memref<8x128xf32, #tpu.memory_space<vmem>>, vector<8x128xf32>
    tpu.vector_store %arg8[%c0_86, %c0_87], %199 {strides = array<i32>} : memref<8x128xf32, #tpu.memory_space<vmem>>, vector<8x128xf32>,
    return
  }
}

</mosaic_0001>

<bundles_post_ra>
// kernel: _lambda_.1
= control target key start
LH: loop header
LB: loop body
LE: loop exit
PB: predicated region body
PF: predicated region fallthrough
CT: control target
= control target key end

     0   :  { %v46_v0 = vlaneseq  ;;  %v3289_v1 = vmov 0   ;;  %vm116_vm0 = vcmask 80896   ;;  %vm129_vm2 = vcmask 1044480   ;;  %s4326_s0 = inlined_call_operand.vmem [shape: f32[64,10], index: 0, kind: input, shape index: {}]   ;;  %s4327_s1 = inlined_call_operand.vmem [shape: f32[128,11], index: 1, kind: input, shape index: {}]   ;;  %s4328_s2 = inlined_call_operand.vmem [shape: s32[128,1], index: 2, kind: input, shape index: {}]   ;;  %s4329_s5 = inlined_call_operand.vmem [shape: bf16[32,384], index: 5, kind: input, shape index: {}]   ;;  %s4330_s3 = inlined_call_operand.vmem [shape: s32[1,192], index: 3, kind: input, shape index: {}]   ;;  %s4331_s6 = inlined_call_operand.vmem [shape: bf16[3,128,128], index: 6, kind: input, shape index: {}]   ;;  %s4332_s4 = inlined_call_operand.vmem [shape: f32[18,1,128], index: 4, kind: input, shape index: {}]   ;;  %s4333_s7 = inlined_call_operand.vmem [shape: bf16[192,128], index: 7, kind: input, shape index: {}]   ;;  %s4334_s8 = inlined_call_operand.vmem [shape: f32[8,128], index: 8, kind: output, shape index: {}]  }
   0x1   :  { %3244 = vset.pattern.permute.xlu1 %v3289_v1  ;;  %3243 = vset.pattern.permute.xlu0 %v3289_v1  ;;  %v3344_v2 = vld [vmem:[%s4326_s0] sm:$0xff]  ;;  %v3349_v3 = vld [vmem:[%s4326_s0 + $0x8] sm:$0xff]  ;;  %v3368_v8 = vld [vmem:[%s4327_s1 + $0x10] sm:$0xff]  ;;  %vm378_vm4 = vcmask 1045504   ;;  %v3290_v23 = vmov 65535   ;;  %v3291_v25 = vmov 0.0  }
   0x2   :  { %v3354_v4 = vld [vmem:[%s4326_s0 + $0x20] sm:$0xff]  ;;  %v3356_v5 = vand.u32 127, %v46_v0  ;;  %v3358_v6 = vshrl.u32 %v46_v0, 7  ;;  %v3363_v7 = vld [vmem:[%s4326_s0 + $0x28] sm:$0xff]  ;;  %v112_v9 = vpack.c.bf16 %v3349_v3, %v3344_v2  ;;  %v3210_v14 = vtrunc.f32 %v3368_v8  ;;  %v3390_v15 = vld [vmem:[%s4327_s1 + $0x18] sm:$0xff] }
   0x3   :  { %v114_v10 = vpack.c.bf16 %v3363_v7, %v3354_v4  ;;  %v3377_v11 = vld [vmem:[%s4327_s1] sm:$0xff]  ;;  %v207_v19 = vld [vmem:[%s4327_s1 + $0x8] sm:$0xff]  ;;  %v379_v24 = vsel %vm129_vm2, 4294967295, %v3290_v23  ;;  %v3408_v27 = vld [vmem:[%s4326_s0 + $0x10] sm:$0xff]  ;;  %v3212_v28 = vtrunc.f32 %v3390_v15  ;;  %vm353_vm10 = vcmask 89088  }
   0x4   :  { %v3380_v12 = vadd.s32 8, %v3358_v6  ;;  %v99_v13 = vadd.s32 118, %v3358_v6  ;;  %vm103_vm1 = vcmp.gt.s32.totalorder %v3358_v6, 0  ;;  %2864 = vmatprep.mubr.msk.bf16.mxu0 %vm116_vm0, %v112_v9  ;;  %v3206_v16 = vtrunc.f32 %v3377_v11  ;;  %v3414_v29 = vld [vmem:[%s4327_s1 + $0x28] sm:$0xff]  ;;  %v3419_v30 = vld [vmem:[%s4327_s1 + $0x20] sm:$0xff]  ;;  %v3425_v32 = vld [vmem:[%s4326_s0 + $0x18] sm:$0xff] }
   0x5   :  { %2868 = vmatprep.mubr.msk.bf16.mxu1 %vm116_vm0, %v114_v10  ;;  %v3211_v18 = vcvt.f32.s32 %v3210_v14  ;;  %v334_v21 = vadd.s32 21, %v3358_v6  ;;  %v3430_v33 = vld [vmem:[%s4326_s0 + $0x30] sm:$0xff]  ;;  %v3435_v34 = vld [vmem:[%s4326_s0 + $0x38] sm:$0xff]  ;;  %v3208_v35 = vtrunc.f32 %v207_v19  ;;  %v380_v38 = vsel %vm378_vm4, %v379_v24, 0  ;;  %v215_v56 = vld [vmem:[%s4327_s1 + $0x48] sm:$0xff] }
   0x6   :  { %v100_v17 = vadd.s32 118, %v3380_v12  ;;  %vm101_vm3 = vcmp.eq.s32.totalorder %v3356_v5, %v99_v13  ;;  %v3207_v20 = vcvt.f32.s32 %v3206_v16  ;;  %v335_v22 = vadd.s32 21, %v3380_v12  ;;  %v213_v44 = vld [vmem:[%s4327_s1 + $0x38] sm:$0xff]  ;;  %v212_v49 = vld [vmem:[%s4327_s1 + $0x30] sm:$0xff]  ;;  %v214_v57 = vld [vmem:[%s4327_s1 + $0x40] sm:$0xff] }
   0x7   :  { %vm105_vm5 = vmand %vm101_vm3, %vm103_vm1  ;;  %245 = vperm.xlu1 %3244, %v3211_v18   ;;  %vm336_vm7 = vcmp.eq.s32.totalorder %v3356_v5, %v334_v21  ;;  %v3213_v39 = vcvt.f32.s32 %v3212_v28  ;;  %v3209_v41 = vcvt.f32.s32 %v3208_v35  ;;  %v3216_v42 = vtrunc.f32 %v3414_v29  ;;  %v217_v13 = vld [vmem:[%s4327_s1 + $0x58] sm:$0xff]  ;;  %v218_v23 = vld [vmem:[%s4327_s1 + $0x60] sm:$0xff] }
   0x8   :  { %vm102_vm6 = vcmp.eq.s32.totalorder %v3356_v5, %v100_v17  ;;  %v2477_v26 = vsel %vm105_vm5, 1.0, %v3291_v25  ;;  %239 = vperm.xlu0 %3243, %v3207_v20   ;;  %vm337_vm8 = vcmp.eq.s32.totalorder %v3356_v5, %v335_v22  ;;  %vm338_vm9 = vmand %vm336_vm7, %vm103_vm1  ;;  %v3214_v43 = vtrunc.f32 %v3419_v30  ;;  %v219_v22 = vld [vmem:[%s4327_s1 + $0x68] sm:$0xff] }
   0x9   :  { %v2478_v31 = vsel %vm102_vm6, 1.0, %v3291_v25  ;;  %v2500_v37 = vsel %vm337_vm8, 1.0, %v3291_v25  ;;  %v2499_v40 = vsel %vm338_vm9, 1.0, %v3291_v25  ;;  %v113_v46 = vpack.c.bf16 %v3425_v32, %v3408_v27 }
   0xa   :  { %v111_v36 = vpack.c.bf16 %v2478_v31, %v2477_v26  ;;  %v115_v47 = vpack.c.bf16 %v3435_v34, %v3430_v33  ;;  %v344_v48 = vpack.c.bf16 %v2500_v37, %v2499_v40  ;;  %v345_v50 = vpack.c.bf16 %v207_v19, %v3377_v11  ;;  %v220_v37 = vld [vmem:[%s4327_s1 + $0x70] sm:$0xff] }
   0xb   :  { %248 = vperm.xlu1 %3244, %v3213_v39   ;;  %v3217_v52 = vcvt.f32.s32 %v3216_v42  ;;  %v3220_v53 = vtrunc.f32 %v213_v44  ;;  %v3215_v54 = vcvt.f32.s32 %v3214_v43  ;;  %v3218_v55 = vtrunc.f32 %v212_v49 }
   0xc   :  { %3188 = vmatprep.subr.msk.bf16.mxu0 %vm129_vm2, %v111_v36  ;;  %3189 = vmatprep.subr.msk.bf16.mxu1 %vm129_vm2, %v111_v36  ;;  %v131_v45 = vsel %vm129_vm2, %v111_v36, 0  ;;  %v382_v51 = vand.u32 %v380_v38, %v344_v48  ;;  %v3224_v59 = vtrunc.f32 %v215_v56  ;;  %v3222_v61 = vtrunc.f32 %v214_v57  ;;  %v221_v38 = vld [vmem:[%s4327_s1 + $0x78] sm:$0xff]  ;;  %v508_v48 = vld [vmem:[%s4328_s2 + $0x8] sm:$0xff] }
   0xd   :  { %2863 = vmatpush3.bf16.msra.mxu0 %v131_v45  ;;  %3171 = vmatpush3.bf16.msra.mxu1 %v131_v45  ;;  %v3221_v58 = vcvt.f32.s32 %v3220_v53  ;;  %v3219_v60 = vcvt.f32.s32 %v3218_v55  ;;  %v346_v62 = vpack.c.bf16 %v3390_v15, %v3368_v8  ;;  %v347_v63 = vpack.c.bf16 %v3414_v29, %v3419_v30  ;;  %v216_v8 = vld [vmem:[%s4327_s1 + $0x50] sm:$0xff]  ;;  %v515_v55 = vld [vmem:[%s4328_s2 + $0x40] sm:$0xff] }
   0xe   :  { %242 = vperm.xlu0 %3243, %v3209_v41   ;;  %2872 = vmatprep.subr.bf16.mxu1 %v382_v51  ;;  %v3192_v0 = vtrunc.f32 %v3349_v3  ;;  %v3225_v9 = vcvt.f32.s32 %v3224_v59  ;;  %v3190_v10 = vtrunc.f32 %v3344_v2  ;;  %v3223_v11 = vcvt.f32.s32 %v3222_v61  ;;  %v513_v53 = vld [vmem:[%s4328_s2 + $0x30] sm:$0xff]  ;;  %v519_v59 = vld [vmem:[%s4328_s2 + $0x60] sm:$0xff] }
   0xf   :  { %254 = vperm.xlu1 %3244, %v3217_v52   ;;  %v3228_v14 = vtrunc.f32 %v217_v13  ;;  %v3226_v2 = vtrunc.f32 %v216_v8  ;;  %v348_v16 = vpack.c.bf16 %v213_v44, %v212_v49  ;;  %v349_v17 = vpack.c.bf16 %v215_v56, %v214_v57  ;;  %v509_v49 = vld [vmem:[%s4328_s2 + $0x10] sm:$0xff]  ;;  %v514_v52 = vld [vmem:[%s4328_s2 + $0x38] sm:$0xff] }
  0x10   :  { %2865 = vmatmul.mubr.msk.bf16.vlgmr.msra.gmra.mrb[0].mxu0 %vm116_vm0, %v113_v46  ;;  %2869 = vmatmul.mubr.msk.bf16.vlgmr.msra.gmra.mrb[0].mxu1 %vm116_vm0, %v115_v47  ;;  %v3193_v3 = vcvt.f32.s32 %v3192_v0  ;;  %v3191_v15 = vcvt.f32.s32 %v3190_v10  ;;  %v3196_v19 = vtrunc.f32 %v3425_v32  ;;  %v3194_v21 = vtrunc.f32 %v3408_v27  ;;  %v518_v56 = vld [vmem:[%s4328_s2 + $0x58] sm:$0xff]  ;;  %v517_v57 = vld [vmem:[%s4328_s2 + $0x50] sm:$0xff] }
  0x11   :  { %2874 = vmatprep.mubr.msk.bf16.mxu1 %vm353_vm10, %v345_v50  ;;  %2873 = vmatpush3.bf16.msra.mxu1 %v382_v51  ;;  %v3229_v18 = vcvt.f32.s32 %v3228_v14  ;;  %v3227_v20 = vcvt.f32.s32 %v3226_v2  ;;  %v3232_v26 = vtrunc.f32 %v219_v22  ;;  %v3230_v29 = vtrunc.f32 %v218_v23  ;;  %v512_v50 = vld [vmem:[%s4328_s2 + $0x28] sm:$0xff]  ;;  %v511_v51 = vld [vmem:[%s4328_s2 + $0x20] sm:$0xff]  ;;  %v521_v61 = vld [vmem:[%s4328_s2 + $0x70] sm:$0xff] }
  0x12   :  { %251 = vperm.xlu0 %3243, %v3215_v54   ;;  %770 = vmatprep.mubr.bf16.mxu0 %v3289_v1  ;;  %v3197_v24 = vcvt.f32.s32 %v3196_v19  ;;  %v3195_v28 = vcvt.f32.s32 %v3194_v21  ;;  %v350_v30 = vpack.c.bf16 %v217_v13, %v216_v8  ;;  %v351_v27 = vpack.c.bf16 %v219_v22, %v218_v23  ;;  %v516_v54 = vld [vmem:[%s4328_s2 + $0x48] sm:$0xff]  ;;  %v3249_v0 = vld [vmem:[%s4329_s5 + $0x4] ss:$12 sps:$4 sm:$0xff]  }
  0x13   :  { %260 = vperm.xlu1 %3244, %v3221_v58   ;;  %v3200_v31 = vtrunc.f32 %v3363_v7  ;;  %v3233_v32 = vcvt.f32.s32 %v3232_v26  ;;  %v3198_v35 = vtrunc.f32 %v3354_v4  ;;  %v3231_v36 = vcvt.f32.s32 %v3230_v29  ;;  %v520_v58 = vld [vmem:[%s4328_s2 + $0x68] sm:$0xff]  ;;  %738 = vmatprep.subr.bf16.mxu0 %v3249_v0 }
  0x14   :  { %v3236_v39 = vtrunc.f32 %v221_v38  ;;  %v3234_v4 = vtrunc.f32 %v220_v37  ;;  %v352_v41 = vpack.c.bf16 %v221_v38, %v220_v37  ;;  %v3204_v43 = vtrunc.f32 %v3435_v34  ;;  %v507_v34 = vld [vmem:[%s4328_s2] sm:$0xff]  ;;  %v3252_v10 = vld [vmem:[%s4329_s5 + $0x1c] ss:$12 sps:$4 sm:$0xff]  }
  0x15   :  { %v3201_v7 = vcvt.f32.s32 %v3200_v31  ;;  %v3199_v40 = vcvt.f32.s32 %v3198_v35  ;;  %v3202_v45 = vtrunc.f32 %v3430_v33  ;;  %v510_v33 = vld [vmem:[%s4328_s2 + $0x18] sm:$0xff]  ;;  %vm713_vm4 = vcmask 261120  }
  0x16   :  { %257 = vperm.xlu0 %3243, %v3219_v60   ;;  %v3237_v42 = vcvt.f32.s32 %v3236_v39  ;;  %v3235_v44 = vcvt.f32.s32 %v3234_v4  ;;  %v3205_v46 = vcvt.f32.s32 %v3204_v43  ;;  %v522_v60 = vld [vmem:[%s4328_s2 + $0x78] sm:$0xff] }
  0x17   :  { %266 = vperm.xlu1 %3244, %v3225_v9   ;;  %v3203_v47 = vcvt.f32.s32 %v3202_v45  ;;  %v3247_v9 = vld [vmem:[%s4329_s5] ss:$12 sps:$4 sm:$0xff]  }
  0x18   :  { %2875 = vmatmul.mubr.msk.bf16.vlgmr.msra.gmra.mrb[4].mxu1 %vm353_vm10, %v346_v62  ;;  %v3245_v62 = vld [vmem:[%s4329_s5 + $0x8] ss:$12 sps:$4 sm:$0xff]   ;;  %739 = vmatpush1.bf16.msra.mxu0 %v3247_v9 }
  0x19   :  { %2878 = vmatprep.mubr.msk.bf16.mxu1 %vm353_vm10, %v347_v63  ;;  %2890 = vmatprep.subr.bf16.mxu1 %v3245_v62  ;;  %v3246_v63 = vld [vmem:[%s4329_s5 + $0x20] ss:$12 sps:$4 sm:$0xff]  }
  0x1a   :  { %263 = vperm.xlu0 %3243, %v3223_v11   ;;  %2891 = vmatpush3.bf16.msra.mxu1 %v3245_v62  ;;  %v3250_v11 = vld [vmem:[%s4329_s5 + $0x18] ss:$12 sps:$4 sm:$0xff]  }
  0x1b   :  { %52 = vperm.xlu1 %3244, %v3193_v3   ;;  %2892 = vmatprep.subr.bf16.mxu1 %v3246_v63 }
  0x1c   :  { %740 = vmatprep.subr.bf16.mxu0 %v3252_v10 }
  0x1d   :  { %741 = vmatpush1.bf16.msra.mxu0 %v3250_v11 }
  0x1e   :  { %49 = vperm.xlu0 %3243, %v3191_v15   ;;  %2893 = vmatpush3.bf16.msra.mxu1 %v3246_v63 }
  0x1f   :  { %272 = vperm.xlu1 %3244, %v3229_v18  }
  0x20   :  { %2879 = vmatmul.mubr.msk.bf16.gmra.mrb[8].mxu1 %vm353_vm10, %v348_v16 }
  0x21   :  { %2882 = vmatprep.mubr.msk.bf16.mxu1 %vm353_vm10, %v349_v17 }
  0x22   :  { %269 = vperm.xlu0 %3243, %v3227_v20  }
  0x23   :  { %58 = vperm.xlu1 %3244, %v3197_v24  }
  0x26   :  { %55 = vperm.xlu0 %3243, %v3195_v28  }
  0x27   :  { %278 = vperm.xlu1 %3244, %v3233_v32  }
  0x28   :  { %2883 = vmatmul.mubr.msk.bf16.gmra.mrb[12].mxu1 %vm353_vm10, %v350_v30 }
  0x29   :  { %2886 = vmatprep.mubr.msk.bf16.mxu1 %vm353_vm10, %v351_v27 }
  0x2a   :  { %275 = vperm.xlu0 %3243, %v3231_v36  }
  0x2b   :  { %64 = vperm.xlu1 %3244, %v3201_v7  }
  0x2e   :  { %61 = vperm.xlu0 %3243, %v3199_v40  }
  0x2f   :  { %284 = vperm.xlu1 %3244, %v3237_v42  }
  0x30   :  { %2887 = vmatmul.mubr.msk.bf16.gmra.mrb[16].mxu1 %vm353_vm10, %v352_v41 }
  0x32   :  { %281 = vperm.xlu0 %3243, %v3235_v44  }
  0x33   :  { %70 = vperm.xlu1 %3244, %v3205_v46  }
  0x36   :  { %67 = vperm.xlu0 %3243, %v3203_v47  }
  0x37   :  { %527 = vperm.xlu1 %3244, %v508_v48  }
  0x3a   :  { %524 = vperm.xlu0 %3243, %v507_v34  }
  0x3b   :  { %533 = vperm.xlu1 %3244, %v510_v33  }
  0x3e   :  { %530 = vperm.xlu0 %3243, %v509_v49  }
  0x3f   :  { %539 = vperm.xlu1 %3244, %v512_v50  }
  0x42   :  { %536 = vperm.xlu0 %3243, %v511_v51  }
  0x43   :  { %545 = vperm.xlu1 %3244, %v514_v52  }
  0x46   :  { %542 = vperm.xlu0 %3243, %v513_v53  }
  0x47   :  { %551 = vperm.xlu1 %3244, %v516_v54  }
  0x4a   :  { %548 = vperm.xlu0 %3243, %v515_v55  }
  0x4b   :  { %557 = vperm.xlu1 %3244, %v518_v56  }
  0x4e   :  { %554 = vperm.xlu0 %3243, %v517_v57  }
  0x4f   :  { %563 = vperm.xlu1 %3244, %v520_v58  }
  0x52   :  { %560 = vperm.xlu0 %3243, %v519_v59  }
  0x53   :  { %569 = vperm.xlu1 %3244, %v522_v60  }
  0x56   :  { %566 = vperm.xlu0 %3243, %v521_v61  }
  0x86   :  { %v246_v13 = vpop.permute.xlu1 %245 }
  0x87   :  { %v240_v8 = vpop.permute.xlu0 %239  ;;  %vm288_vm13 = vcmp.eq.s32.totalorder %v3356_v5, %v246_v13 }
  0x88   :  { %vm286_vm14 = vcmp.eq.s32.totalorder %v3356_v5, %v240_v8  ;;  %v2485_v48 = vsel %vm288_vm13, 1.0, %v3291_v25 }
  0x89   :  { %v2483_v34 = vsel %vm286_vm14, 1.0, %v3291_v25 }
  0x8a   :  { %v249_v3 = vpop.permute.xlu1 %248 }
  0x8b   :  { %vm289_vm15 = vcmp.eq.s32.totalorder %v3356_v5, %v249_v3 }
  0x8c   :  { %v2486_v33 = vsel %vm289_vm15, 1.0, %v3291_v25 }
  0x8d   :  { %v243_v14 = vpop.permute.xlu0 %242 }
  0x8e   :  { %v3573_v15 = vpop.permute.xlu1 %254  ;;  %vm287_vm0 = vcmp.eq.s32.totalorder %v3356_v5, %v243_v14 }
  0x8f   :  { %v2484_v52 = vsel %vm287_vm0, 1.0, %v3291_v25  ;;  %vm291_vm5 = vcmp.eq.s32.totalorder %v3356_v5, %v3573_v15 }
  0x90   :  { %v2488_v8 = vsel %vm291_vm5, 1.0, %v3291_v25 }
  0x91   :  { %v3575_v2 = vpop.permute.xlu0 %251 }
  0x92   :  { %v3577_v16 = vpop.permute.xlu1 %260  ;;  %vm290_vm6 = vcmp.eq.s32.totalorder %v3356_v5, %v3575_v2 }
  0x93   :  { %vm293_vm7 = vcmp.eq.s32.totalorder %v3356_v5, %v3577_v16 }
  0x95   :  { %v3579_v17 = vpop.permute.xlu0 %257 }
  0x96   :  { %v3581_v18 = vpop.permute.xlu1 %266  ;;  %vm292_vm8 = vcmp.eq.s32.totalorder %v3356_v5, %v3579_v17  ;;  %v2487_v17 = vsel %vm290_vm6, 1.0, %v3291_v25 }
  0x97   :  { %v2489_v14 = vsel %vm292_vm8, 1.0, %v3291_v25  ;;  %vm295_vm14 = vcmp.eq.s32.totalorder %v3356_v5, %v3581_v18 }
  0x99   :  { %v3583_v19 = vpop.permute.xlu0 %263 }
  0x9a   :  { %v53_v20 = vpop.permute.xlu1 %52  ;;  %vm294_vm15 = vcmp.eq.s32.totalorder %v3356_v5, %v3583_v19 }
  0x9b   :  { %vm73_vm11 = vcmp.eq.s32.totalorder %v3356_v5, %v53_v20  ;;  %v2490_v20 = vsel %vm293_vm7, 1.0, %v3291_v25  ;;  %vm952_vm7 = vcmask 523264  }
  0x9c   :  { %v2470_v39 = vsel %vm73_vm11, 1.0, %v3291_v25 }
  0x9d   :  { %v50_v21 = vpop.permute.xlu0 %49 }
  0x9e   :  { %v3585_v22 = vpop.permute.xlu1 %272  ;;  %vm72_vm12 = vcmp.eq.s32.totalorder %v3356_v5, %v50_v21 }
  0x9f   :  { %v2469_v7 = vsel %vm72_vm12, 1.0, %v3291_v25  ;;  %vm297_vm12 = vcmp.eq.s32.totalorder %v3356_v5, %v3585_v22 }
  0xa0   :  { %v2494_v19 = vsel %vm297_vm12, 1.0, %v3291_v25 }
  0xa1   :  { %v3587_v23 = vpop.permute.xlu0 %269 }
  0xa2   :  { %v59_v24 = vpop.permute.xlu1 %58  ;;  %vm296_vm13 = vcmp.eq.s32.totalorder %v3356_v5, %v3587_v23 }
  0xa3   :  { %vm75_vm1 = vcmp.eq.s32.totalorder %v3356_v5, %v59_v24 }
  0xa4   :  { %v2472_v54 = vsel %vm75_vm1, 1.0, %v3291_v25 }
  0xa5   :  { %v56_v26 = vpop.permute.xlu0 %55 }
  0xa6   :  { %v3589_v28 = vpop.permute.xlu1 %278  ;;  %vm74_vm2 = vcmp.eq.s32.totalorder %v3356_v5, %v56_v26 }
  0xa7   :  { %v2471_v61 = vsel %vm74_vm2, 1.0, %v3291_v25  ;;  %vm299_vm2 = vcmp.eq.s32.totalorder %v3356_v5, %v3589_v28 }
  0xa9   :  { %v3591_v29 = vpop.permute.xlu0 %275 }
  0xaa   :  { %v65_v30 = vpop.permute.xlu1 %64 }
  0xab   :  { %vm77_vm3 = vcmp.eq.s32.totalorder %v3356_v5, %v65_v30 }
  0xac   :  { %v2474_v0 = vsel %vm77_vm3, 1.0, %v3291_v25  ;;  %vm298_vm3 = vcmp.eq.s32.totalorder %v3356_v5, %v3591_v29 }
  0xad   :  { %v3593_v27 = vpop.permute.xlu0 %61 }
  0xae   :  { %v3614_v44 = vpop.permute.xlu1 %284  ;;  %vm76_vm9 = vcmp.eq.s32.totalorder %v3356_v5, %v3593_v27 }
  0xaf   :  { %v2473_v3 = vsel %vm76_vm9, 1.0, %v3291_v25  ;;  %vm301_vm0 = vcmp.eq.s32.totalorder %v3356_v5, %v3614_v44 }
  0xb0   :  { %v2498_v44 = vsel %vm301_vm0, 1.0, %v3291_v25 }
  0xb1   :  { %v3617_v45 = vpop.permute.xlu0 %281 }
  0xb2   :  { %v71_v57 = vpop.permute.xlu1 %70  ;;  %vm300_vm1 = vcmp.eq.s32.totalorder %v3356_v5, %v3617_v45 }
  0xb3   :  { %vm79_vm10 = vcmp.eq.s32.totalorder %v3356_v5, %v71_v57  ;;  %v2497_v29 = vsel %vm300_vm1, 1.0, %v3291_v25 }
  0xb5   :  { %v68_v60 = vpop.permute.xlu0 %67 }
  0xb6   :  { %vm78_vm11 = vcmp.eq.s32.totalorder %v3356_v5, %v68_v60  ;;  %v3669_v15 = vpop.permute.xlu1 %527  ;;  %v2495_v60 = vsel %vm298_vm3, 1.0, %v3291_v25 }
  0xb7   :  { %vm572_vm5 = vcmp.eq.s32.totalorder %v3356_v5, %v3669_v15 }
  0xb9   :  { %v3674_v2 = vpop.permute.xlu0 %524 }
  0xba   :  { %vm571_vm6 = vcmp.eq.s32.totalorder %v3356_v5, %v3674_v2 }
  0xe3   :  { %v2866_v31 = vpop.f32.mrb[0].mxu0  ;;  %v3597_v32 = vpop.f32.mrb[0].mxu1 }
  0xe4   :  { %v167_v35 = vpop.f32.mrb[1].mxu0  ;;  %v3599_v36 = vpop.f32.mrb[1].mxu1  ;;  %v3642_v63 = vadd.f32 %v2866_v31, %v2471_v61  ;;  %v2476_v31 = vsel %vm79_vm10, 1.0, %v3291_v25 }
  0xe5   :  { %v2867_v37 = vpop.f32.mrb[2].mxu0  ;;  %v3601_v38 = vpop.f32.mrb[2].mxu1  ;;  %v3605_v41 = vadd.f32 %v2469_v7, %v167_v35  ;;  %v3672_v24 = vadd.f32 %v2473_v3, %v3599_v36 }
  0xe6   :  { %v170_v40 = vpop.f32.mrb[3].mxu0  ;;  %v186_v4 = vpop.f32.mrb[3].mxu1  ;;  %v3627_v58 = vadd.f32 %v2867_v37, %v2472_v54  ;;  %v3680_v37 = vadd.f32 %v3601_v38, %v2476_v31 }
  0xe7   :  { %v3607_v42 = vadd.f32 %v2470_v39, %v170_v40  ;;  %v3650_v11 = vadd.f32 %v2474_v0, %v186_v4  ;;  %v2475_v39 = vsel %vm78_vm11, 1.0, %v3291_v25 }
  0xe8   :  { %v949_v10 = vpack.c.bf16 %v3627_v58, %v3642_v63  ;;  %v3692_v4 = vadd.f32 %v3597_v32, %v2475_v39  ;;  %v531_v32 = vpop.permute.xlu0 %530 }
  0xe9   :  { %v948_v43 = vpack.c.bf16 %v3607_v42, %v3605_v41  ;;  %v950_v7 = vpack.c.bf16 %v3650_v11, %v3672_v24  ;;  %vm573_vm9 = vcmp.eq.s32.totalorder %v3356_v5, %v531_v32 }
  0xea   :  { %v951_v23 = vpack.c.bf16 %v3680_v37, %v3692_v4  ;;  %v2511_v15 = vsel %vm573_vm9, 1.0, %v3291_v25 }
  0xeb   :  { %v2876_v46 = vpop.f32.mrb[4].mxu1  ;;  %2910 = vmatprep.subr.bf16.mxu1 %v948_v43 }
  0xec   :  { %v418_v47 = vpop.f32.mrb[5].mxu1  ;;  %v483_v50 = vadd.f32 %v2876_v46, %v2485_v48  ;;  %v537_v18 = vpop.permute.xlu0 %536 }
  0xed   :  { %v2877_v49 = vpop.f32.mrb[6].mxu1  ;;  %v481_v55 = vadd.f32 %v2483_v34, %v418_v47  ;;  %v2493_v47 = vsel %vm296_vm13, 1.0, %v3291_v25  ;;  %vm575_vm11 = vcmp.eq.s32.totalorder %v3356_v5, %v537_v18  ;;  %v3254_v18 = vld [vmem:[%s4331_s6 + $0x8] sm:$0xff]  }
  0xee   :  { %v484_v51 = vadd.f32 %v2877_v49, %v2486_v33  ;;  %v421_v53 = vpop.f32.mrb[7].mxu1  ;;  %v2491_v33 = vsel %vm294_vm15, 1.0, %v3291_v25  ;;  %v2513_v2 = vsel %vm575_vm11, 1.0, %v3291_v25 }
  0xef   :  { %v482_v56 = vadd.f32 %v2484_v52, %v421_v53 }
  0xf0   :  { %v498_v59 = vpack.c.bf16 %v484_v51, %v483_v50  ;;  %v2492_v50 = vsel %vm295_vm14, 1.0, %v3291_v25 }
  0xf1   :  { %v497_v62 = vpack.c.bf16 %v482_v56, %v481_v55 }
  0xf3   :  { %v2880_v9 = vpop.f32.mrb[8].mxu1  ;;  %2542 = vmatmul.mubr.msk.bf16.vlgmr.msra.gmra.mrb[4].mxu0 %vm713_vm4, %v497_v62  ;;  %2894 = vmatprep.mubr.msk.bf16.mxu1 %vm713_vm4, %v497_v62  ;;  %v2496_v62 = vsel %vm299_vm2, 1.0, %v3291_v25 }
  0xf4   :  { %v434_v13 = vpop.f32.mrb[9].mxu1  ;;  %2895 = vmatmul.mubr.msk.bf16.vlgmr.msra.gmra.mrb[20].mxu1 %vm713_vm4, %v498_v59  ;;  %780 = vmatprep.mubr.bf16.mxu0 %v3289_v1  ;;  %v487_v26 = vadd.f32 %v2880_v9, %v2489_v14 }
  0xf5   :  { %2911 = vmatpush3.bf16.msra.mxu1 %v948_v43  ;;  %v2881_v21 = vpop.f32.mrb[10].mxu1  ;;  %v485_v16 = vadd.f32 %v2487_v17, %v434_v13  ;;  %v3700_v43 = vpop.permute.xlu1 %533  ;;  %v2510_v13 = vsel %vm572_vm5, 1.0, %v3291_v25 }
  0xf6   :  { %v488_v30 = vadd.f32 %v2881_v21, %v2490_v20  ;;  %2912 = vmatprep.subr.bf16.mxu1 %v949_v10  ;;  %v437_v27 = vpop.f32.mrb[11].mxu1  ;;  %v543_v17 = vpop.permute.xlu0 %542  ;;  %vm574_vm8 = vcmp.eq.s32.totalorder %v3356_v5, %v3700_v43 }
  0xf7   :  { %v486_v35 = vadd.f32 %v2488_v8, %v437_v27  ;;  %v2509_v8 = vsel %vm571_vm6, 1.0, %v3291_v25  ;;  %v2512_v28 = vsel %vm574_vm8, 1.0, %v3291_v25  ;;  %vm577_vm13 = vcmp.eq.s32.totalorder %v3356_v5, %v543_v17 }
  0xf8   :  { %v3684_v36 = vpack.c.bf16 %v488_v30, %v487_v26  ;;  %v3747_v21 = vpack.c.bf16 %v2510_v13, %v2509_v8  ;;  %v3766_v31 = vpack.c.bf16 %v2512_v28, %v2511_v15  ;;  %v2515_v39 = vsel %vm577_vm13, 1.0, %v3291_v25 }
  0xf9   :  { %v499_v40 = vpack.c.bf16 %v486_v35, %v485_v16  ;;  %2913 = vmatpush3.bf16.msra.mxu1 %v949_v10  ;;  %v540_v22 = vpop.permute.xlu1 %539 }
  0xfa   :  { %2914 = vmatprep.subr.bf16.mxu1 %v950_v7  ;;  %vm576_vm10 = vcmp.eq.s32.totalorder %v3356_v5, %v540_v22  ;;  %v549_v30 = vpop.permute.xlu0 %548  ;;  %v3253_v22 = vld [vmem:[%s4331_s6] sm:$0xff]  }
  0xfb   :  { %v2884_v38 = vpop.f32.mrb[12].mxu1  ;;  %2543 = vmatmul.mubr.msk.bf16.gmra.mrb[8].mxu0 %vm713_vm4, %v498_v59  ;;  %2898 = vmatprep.mubr.msk.bf16.mxu1 %vm713_vm4, %v499_v40  ;;  %v2514_v27 = vsel %vm576_vm10, 1.0, %v3291_v25  ;;  %vm579_vm15 = vcmp.eq.s32.totalorder %v3356_v5, %v549_v30 }
  0xfc   :  { %v450_v46 = vpop.f32.mrb[13].mxu1  ;;  %2899 = vmatmul.mubr.msk.bf16.gmra.mrb[24].mxu1 %vm713_vm4, %v3684_v36  ;;  %790 = vmatprep.mubr.bf16.mxu0 %v3289_v1  ;;  %v491_v34 = vadd.f32 %v2884_v38, %v2493_v47  ;;  %v3768_v16 = vpack.c.bf16 %v2514_v27, %v2513_v2  ;;  %v2517_v38 = vsel %vm579_vm15, 1.0, %v3291_v25  ;;  %v3878_v27 = vld [vmem:[%s4332_s4] ss:$0 sm:$0xff] }
  0xfd   :  { %2915 = vmatpush3.bf16.msra.mxu1 %v950_v7  ;;  %v2885_v48 = vpop.f32.mrb[14].mxu1  ;;  %v489_v52 = vadd.f32 %v2491_v33, %v450_v46  ;;  %v546_v14 = vpop.permute.xlu1 %545 }
  0xfe   :  { %v492_v49 = vadd.f32 %v2885_v48, %v2494_v19  ;;  %2916 = vmatprep.subr.bf16.mxu1 %v951_v23  ;;  %v453_v51 = vpop.f32.mrb[15].mxu1  ;;  %vm578_vm12 = vcmp.eq.s32.totalorder %v3356_v5, %v546_v14  ;;  %v555_v7 = vpop.permute.xlu0 %554 }
  0xff   :  { %v490_v53 = vadd.f32 %v2492_v50, %v453_v51  ;;  %vm581_vm1 = vcmp.eq.s32.totalorder %v3356_v5, %v555_v7 }
 0x100   :  { %v3717_v54 = vpack.c.bf16 %v492_v49, %v491_v34  ;;  %v2519_v19 = vsel %vm581_vm1, 1.0, %v3291_v25 }
 0x101   :  { %v501_v55 = vpack.c.bf16 %v490_v53, %v489_v52  ;;  %2917 = vmatpush3.bf16.msra.mxu1 %v951_v23  ;;  %v552_v26 = vpop.permute.xlu1 %551 }
 0x102   :  { %vm580_vm14 = vcmp.eq.s32.totalorder %v3356_v5, %v552_v26  ;;  %v561_v32 = vpop.permute.xlu0 %560  ;;  %2958 = vmatprep.subr.bf16.mxu1 %v3253_v22 }
 0x103   :  { %v2888_v56 = vpop.f32.mrb[16].mxu1  ;;  %2544 = vmatmul.mubr.msk.bf16.gmra.mrb[12].mxu0 %vm713_vm4, %v499_v40  ;;  %2902 = vmatprep.mubr.msk.bf16.mxu1 %vm713_vm4, %v501_v55  ;;  %v2518_v40 = vsel %vm580_vm14, 1.0, %v3291_v25  ;;  %vm583_vm3 = vcmp.eq.s32.totalorder %v3356_v5, %v561_v32 }
 0x104   :  { %v466_v57 = vpop.f32.mrb[17].mxu1  ;;  %2903 = vmatmul.mubr.msk.bf16.gmra.mrb[28].mxu1 %vm713_vm4, %v3717_v54  ;;  %800 = vmatprep.mubr.bf16.mxu0 %v3289_v1  ;;  %v495_v59 = vadd.f32 %v2888_v56, %v2497_v29  ;;  %v3786_v23 = vpack.c.bf16 %v2518_v40, %v2517_v38  ;;  %v2521_v34 = vsel %vm583_vm3, 1.0, %v3291_v25  ;;  %v3256_v56 = vld [vmem:[%s4331_s6 + $0x18] sm:$0xff]   ;;  %v3258_v29 = vld [vmem:[%s4331_s6 + $0x28] sm:$0xff]   ;;  %vm3293_vm3 = vmmov 0  }
 0x105   :  { %v2889_v45 = vpop.f32.mrb[18].mxu1  ;;  %v493_v9 = vadd.f32 %v2495_v60, %v466_v57  ;;  %v558_v35 = vpop.permute.xlu1 %557  ;;  %v3257_v57 = vld [vmem:[%s4331_s6 + $0x20] sm:$0xff]  }
 0x106   :  { %v496_v61 = vadd.f32 %v2889_v45, %v2498_v44  ;;  %v469_v0 = vpop.f32.mrb[19].mxu1  ;;  %vm582_vm0 = vcmp.eq.s32.totalorder %v3356_v5, %v558_v35  ;;  %v567_v49 = vpop.permute.xlu0 %566 }
 0x107   :  { %v494_v10 = vadd.f32 %v2496_v62, %v469_v0  ;;  %v2520_v47 = vsel %vm582_vm0, 1.0, %v3291_v25  ;;  %vm585_vm6 = vcmp.eq.s32.totalorder %v3356_v5, %v567_v49 }
 0x108   :  { %v3745_v3 = vpack.c.bf16 %v496_v61, %v495_v59  ;;  %v3803_v50 = vpack.c.bf16 %v2520_v47, %v2519_v19  ;;  %v2523_v53 = vsel %vm585_vm6, 1.0, %v3291_v25 }
 0x109   :  { %v503_v20 = vpack.c.bf16 %v494_v10, %v493_v9  ;;  %v564_v46 = vpop.permute.xlu1 %563 }
 0x10a   :  { %vm584_vm2 = vcmp.eq.s32.totalorder %v3356_v5, %v564_v46 }
 0x10b   :  { %2545 = vmatmul.mubr.msk.bf16.gmra.mrb[16].mxu0 %vm713_vm4, %v3684_v36  ;;  %2906 = vmatprep.mubr.msk.bf16.mxu1 %vm713_vm4, %v503_v20  ;;  %v2516_v36 = vsel %vm578_vm12, 1.0, %v3291_v25  ;;  %v2522_v48 = vsel %vm584_vm2, 1.0, %v3291_v25 }
 0x10c   :  { %2907 = vmatmul.mubr.msk.bf16.gmra.mrb[32].mxu1 %vm713_vm4, %v3745_v3  ;;  %810 = vmatprep.mubr.bf16.mxu0 %v3289_v1  ;;  %v3784_v43 = vpack.c.bf16 %v2516_v36, %v2515_v39  ;;  %v3805_v51 = vpack.c.bf16 %v2522_v48, %v2521_v34 }
 0x10d   :  { %2918 = vmatprep.mubr.msk.bf16.mxu1 %vm952_vm7, %v3747_v21  ;;  %v570_v33 = vpop.permute.xlu1 %569 }
 0x10e   :  { %vm586_vm5 = vcmp.eq.s32.totalorder %v3356_v5, %v570_v33  ;;  %v3826_v5 = vld [vmem:[%s4330_s3] ss:$0 sm:$0xff] }
 0x10f   :  { %v2524_v52 = vsel %vm586_vm5, 1.0, %v3291_v25  ;;  %vm637_vm8 = vcmp.eq.s32.totalorder %v3358_v6, %v3826_v5  ;;  %vm638_vm9 = vcmp.eq.s32.totalorder %v3380_v12, %v3826_v5  ;;  %v3255_v12 = vld [vmem:[%s4331_s6 + $0x10] sm:$0xff]  }
 0x110   :  { %vm3832_vm10 = vmpackc.low %vm638_vm9, %vm637_vm8 }
 0x113   :  { %2546 = vmatmul.mubr.msk.bf16.gmra.mrb[20].mxu0 %vm713_vm4, %v501_v55  ;;  %v3292_v55 = vmov 1.0|1.0  }
 0x114   :  { %2919 = vmatmul.mubr.msk.bf16.vlgmr.msra.gmra.mrb[36].mxu1 %vm952_vm7, %v3766_v31  ;;  %820 = vmatprep.mubr.bf16.mxu0 %v3289_v1 }
 0x115   :  { %2922 = vmatprep.mubr.msk.bf16.mxu1 %vm952_vm7, %v3768_v16  ;;  %2959 = vmatpush3.bf16.msra.mxu1 %v3253_v22 }
 0x116   :  { %2960 = vmatprep.subr.bf16.mxu1 %v3254_v18 }
 0x119   :  { %2961 = vmatpush3.bf16.msra.mxu1 %v3254_v18 }
 0x11a   :  { %2962 = vmatprep.subr.bf16.mxu1 %v3255_v12 }
 0x11b   :  { %2547 = vmatmul.mubr.msk.bf16.gmra.mrb[24].mxu0 %vm713_vm4, %v3717_v54  ;;  %v3817_v54 = vpack.c.bf16 %v2524_v52, %v2523_v53 }
 0x11c   :  { %2923 = vmatmul.mubr.msk.bf16.gmra.mrb[40].mxu1 %vm952_vm7, %v3784_v43  ;;  %830 = vmatprep.mubr.bf16.mxu0 %v3289_v1 }
 0x11d   :  { %2926 = vmatprep.mubr.msk.bf16.mxu1 %vm952_vm7, %v3786_v23  ;;  %2963 = vmatpush3.bf16.msra.mxu1 %v3255_v12 }
 0x11e   :  { %2964 = vmatprep.subr.bf16.mxu1 %v3256_v56 }
 0x121   :  { %2965 = vmatpush3.bf16.msra.mxu1 %v3256_v56 }
 0x122   :  { %2966 = vmatprep.subr.bf16.mxu1 %v3257_v57 }
 0x123   :  { %2548 = vmatmul.mubr.msk.bf16.gmra.mrb[28].mxu0 %vm713_vm4, %v503_v20 }
 0x124   :  { %2927 = vmatmul.mubr.msk.bf16.gmra.mrb[44].mxu1 %vm952_vm7, %v3803_v50  ;;  %840 = vmatprep.mubr.bf16.mxu0 %v3289_v1 }
 0x125   :  { %2930 = vmatprep.mubr.msk.bf16.mxu1 %vm952_vm7, %v3805_v51  ;;  %2967 = vmatpush3.bf16.msra.mxu1 %v3257_v57 }
 0x126   :  { %2968 = vmatprep.subr.bf16.mxu1 %v3258_v29 }
 0x129   :  { %2969 = vmatpush3.bf16.msra.mxu1 %v3258_v29 }
 0x12b   :  { %2549 = vmatmul.mubr.msk.bf16.gmra.mrb[32].mxu0 %vm713_vm4, %v3745_v3 }
 0x12c   :  { %2931 = vmatmul.mubr.msk.bf16.gmra.mrb[48].mxu1 %vm952_vm7, %v3817_v54  ;;  %2950 = vmatprep.mubr.msk.bf16.mxu0 %vm3832_vm10, %v3292_v55 }
 0x1c6   :  { %v772_v44 = vpop.f32.mrb[4].mxu0 }
 0x1c7   :  { %v3857_v45 = vpop.f32.mrb[5].mxu0 }
 0x1c8   :  { %v776_v59 = vpop.f32.mrb[6].mxu0 }
 0x1c9   :  { %v3859_v60 = vpop.f32.mrb[7].mxu0 }
 0x1ce   :  { %v782_v61 = vpop.f32.mrb[8].mxu0 }
 0x1cf   :  { %v3861_v62 = vpop.f32.mrb[9].mxu0 }
 0x1d0   :  { %v786_v0 = vpop.f32.mrb[10].mxu0 }
 0x1d1   :  { %v3863_v9 = vpop.f32.mrb[11].mxu0 }
 0x1d6   :  { %v792_v10 = vpop.f32.mrb[12].mxu0 }
 0x1d7   :  { %v3865_v13 = vpop.f32.mrb[13].mxu0 }
 0x1d8   :  { %v796_v8 = vpop.f32.mrb[14].mxu0 }
 0x1d9   :  { %v3867_v3 = vpop.f32.mrb[15].mxu0 }
 0x1de   :  { %v802_v14 = vpop.f32.mrb[16].mxu0 }
 0x1df   :  { %v3869_v17 = vpop.f32.mrb[17].mxu0 }
 0x1e0   :  { %v806_v20 = vpop.f32.mrb[18].mxu0 }
 0x1e1   :  { %v3871_v28 = vpop.f32.mrb[19].mxu0 }
 0x1e6   :  { %v812_v15 = vpop.f32.mrb[20].mxu0 }
 0x1e7   :  { %v3873_v26 = vpop.f32.mrb[21].mxu0  ;;  %v2920_v30 = vpop.f32.mrb[36].mxu1 }
 0x1e8   :  { %v1020_v2 = vadd.f32 %v2920_v30, %v782_v61  ;;  %v816_v35 = vpop.f32.mrb[22].mxu0  ;;  %v1011_v7 = vpop.f32.mrb[37].mxu1 }
 0x1e9   :  { %v1012_v36 = vadd.f32 %v1011_v7, %v772_v44  ;;  %v3880_v39 = vpop.f32.mrb[23].mxu0  ;;  %v2921_v40 = vpop.f32.mrb[38].mxu1 }
 0x1ea   :  { %v1083_v38 = vadd.f32 %v3878_v27, %v1020_v2  ;;  %v1023_v46 = vadd.f32 %v2921_v40, %v786_v0  ;;  %v1014_v32 = vpop.f32.mrb[39].mxu1 }
 0x1eb   :  { %v1081_v47 = vadd.f32 %v3878_v27, %v1012_v36  ;;  %v1015_v19 = vadd.f32 %v1014_v32, %v776_v59 }
 0x1ec   :  { %v1084_v48 = vadd.f32 %v3878_v27, %v1023_v46  ;;  %v1099_v33 = vmax.f32 %v1083_v38, 0.0 }
 0x1ed   :  { %v1082_v34 = vadd.f32 %v3878_v27, %v1015_v19  ;;  %v1097_v53 = vmax.f32 %v1081_v47, 0.0 }
 0x1ee   :  { %v1100_v49 = vmax.f32 %v1084_v48, 0.0  ;;  %v822_v52 = vpop.f32.mrb[24].mxu0 }
 0x1ef   :  { %v1098_v22 = vmax.f32 %v1082_v34, 0.0  ;;  %v3886_v18 = vpop.f32.mrb[25].mxu0  ;;  %v2924_v12 = vpop.f32.mrb[40].mxu1 }
 0x1f0   :  { %v1036_v56 = vadd.f32 %v2924_v12, %v802_v14  ;;  %v826_v57 = vpop.f32.mrb[26].mxu0  ;;  %v1027_v29 = vpop.f32.mrb[41].mxu1  ;;  %v1114_v44 = vpack.c.bf16 %v1100_v49, %v1099_v33 }
 0x1f1   :  { %v1028_v61 = vadd.f32 %v1027_v29, %v792_v10  ;;  %v3888_v0 = vpop.f32.mrb[27].mxu0  ;;  %v2925_v59 = vpop.f32.mrb[42].mxu1  ;;  %v1113_v30 = vpack.c.bf16 %v1098_v22, %v1097_v53 }
 0x1f2   :  { %v1087_v2 = vadd.f32 %v3878_v27, %v1036_v56  ;;  %v1039_v7 = vadd.f32 %v2925_v59, %v806_v20  ;;  %v1030_v36 = vpop.f32.mrb[43].mxu1 }
 0x1f3   :  { %v1085_v40 = vadd.f32 %v3878_v27, %v1028_v61  ;;  %v1031_v38 = vadd.f32 %v1030_v36, %v796_v8  ;;  %2934 = vmatprep.subr.bf16.mxu0 %v1113_v30 }
 0x1f4   :  { %v1088_v46 = vadd.f32 %v3878_v27, %v1039_v7  ;;  %2935 = vmatpush3.bf16.msra.mxu0 %v1113_v30  ;;  %v1103_v32 = vmax.f32 %v1087_v2, 0.0 }
 0x1f5   :  { %v1086_v14 = vadd.f32 %v3878_v27, %v1031_v38  ;;  %2936 = vmatprep.subr.bf16.mxu0 %v1114_v44  ;;  %v1101_v19 = vmax.f32 %v1085_v40, 0.0 }
 0x1f6   :  { %v1104_v10 = vmax.f32 %v1088_v46, 0.0  ;;  %v832_v47 = vpop.f32.mrb[28].mxu0 }
 0x1f7   :  { %v1102_v48 = vmax.f32 %v1086_v14, 0.0  ;;  %v3894_v34 = vpop.f32.mrb[29].mxu0  ;;  %v2928_v33 = vpop.f32.mrb[44].mxu1 }
 0x1f8   :  { %v1052_v20 = vadd.f32 %v2928_v33, %v822_v52  ;;  %v836_v49 = vpop.f32.mrb[30].mxu0  ;;  %v1043_v53 = vpop.f32.mrb[45].mxu1  ;;  %2937 = vmatpush3.bf16.msra.mxu0 %v1114_v44  ;;  %v1116_v8 = vpack.c.bf16 %v1104_v10, %v1103_v32 }
 0x1f9   :  { %v1044_v22 = vadd.f32 %v1043_v53, %v812_v15  ;;  %v3896_v12 = vpop.f32.mrb[31].mxu0  ;;  %v2929_v56 = vpop.f32.mrb[46].mxu1  ;;  %v1115_v29 = vpack.c.bf16 %v1102_v48, %v1101_v19 }
 0x1fa   :  { %v1091_v61 = vadd.f32 %v3878_v27, %v1052_v20  ;;  %v1055_v59 = vadd.f32 %v2929_v56, %v826_v57  ;;  %v1046_v30 = vpop.f32.mrb[47].mxu1 }
 0x1fb   :  { %v1089_v2 = vadd.f32 %v3878_v27, %v1044_v22  ;;  %v1047_v7 = vadd.f32 %v1046_v30, %v816_v35  ;;  %2938 = vmatprep.subr.bf16.mxu0 %v1115_v29 }
 0x1fc   :  { %v1092_v36 = vadd.f32 %v3878_v27, %v1055_v59  ;;  %2939 = vmatpush3.bf16.msra.mxu0 %v1115_v29  ;;  %v1107_v44 = vmax.f32 %v1091_v61, 0.0 }
 0x1fd   :  { %v1090_v52 = vadd.f32 %v3878_v27, %v1047_v7  ;;  %2940 = vmatprep.subr.bf16.mxu0 %v1116_v8  ;;  %v1105_v38 = vmax.f32 %v1089_v2, 0.0 }
 0x1fe   :  { %v1108_v15 = vmax.f32 %v1092_v36, 0.0  ;;  %v842_v40 = vpop.f32.mrb[32].mxu0 }
 0x1ff   :  { %v1106_v46 = vmax.f32 %v1090_v52, 0.0  ;;  %v3902_v14 = vpop.f32.mrb[33].mxu0  ;;  %v2932_v32 = vpop.f32.mrb[48].mxu1 }
 0x200   :  { %v1068_v57 = vadd.f32 %v2932_v32, %v842_v40  ;;  %v846_v10 = vpop.f32.mrb[34].mxu0  ;;  %v1059_v19 = vpop.f32.mrb[49].mxu1  ;;  %2941 = vmatpush3.bf16.msra.mxu0 %v1116_v8  ;;  %v1118_v35 = vpack.c.bf16 %v1108_v15, %v1107_v44  ;;  %v627_v15 = vadd.s32 16, %v3358_v6  ;;  %v628_v40 = vadd.s32 24, %v3358_v6 }
 0x201   :  { %v1060_v48 = vadd.f32 %v1059_v19, %v832_v47  ;;  %v3904_v33 = vpop.f32.mrb[35].mxu0  ;;  %v2933_v20 = vpop.f32.mrb[50].mxu1  ;;  %v1117_v53 = vpack.c.bf16 %v1106_v46, %v1105_v38  ;;  %v630_v38 = vadd.s32 40, %v3358_v6  ;;  %v631_v32 = vadd.s32 48, %v3358_v6  ;;  %v3259_v19 = vld [vmem:[%s4331_s6 + $0x30] sm:$0xff]  }
 0x202   :  { %v1095_v22 = vadd.f32 %v3878_v27, %v1068_v57  ;;  %v1071_v56 = vadd.f32 %v2933_v20, %v846_v10  ;;  %v1062_v29 = vpop.f32.mrb[51].mxu1  ;;  %vm639_vm4 = vcmp.eq.s32.totalorder %v627_v15, %v3826_v5  ;;  %vm640_vm11 = vcmp.eq.s32.totalorder %v628_v40, %v3826_v5  ;;  %2970 = vmatprep.subr.bf16.mxu1 %v3259_v19 }
 0x203   :  { %v1093_v61 = vadd.f32 %v3878_v27, %v1060_v48  ;;  %v1063_v59 = vadd.f32 %v1062_v29, %v836_v49  ;;  %2942 = vmatprep.subr.bf16.mxu0 %v1117_v53  ;;  %v629_v49 = vadd.s32 32, %v3358_v6  ;;  %vm642_vm13 = vcmp.eq.s32.totalorder %v630_v38, %v3826_v5  ;;  %vm3918_vm14 = vmpackc.low %vm640_vm11, %vm639_vm4  ;;  %2971 = vmatpush3.bf16.msra.mxu1 %v3259_v19 }
 0x204   :  { %v1096_v30 = vadd.f32 %v3878_v27, %v1071_v56  ;;  %2943 = vmatpush3.bf16.msra.mxu0 %v1117_v53  ;;  %v1111_v8 = vmax.f32 %v1095_v22, 0.0  ;;  %v632_v57 = vadd.s32 56, %v3358_v6  ;;  %vm643_vm0 = vcmp.eq.s32.totalorder %v631_v32, %v3826_v5 }
 0x205   :  { %v1094_v2 = vadd.f32 %v3878_v27, %v1063_v59  ;;  %2944 = vmatprep.subr.bf16.mxu0 %v1118_v35  ;;  %v1109_v7 = vmax.f32 %v1093_v61, 0.0  ;;  %vm641_vm12 = vcmp.eq.s32.totalorder %v629_v49, %v3826_v5 }
 0x206   :  { %v1112_v47 = vmax.f32 %v1096_v30, 0.0  ;;  %vm3922_vm15 = vmpackc.low %vm642_vm13, %vm641_vm12  ;;  %vm644_vm1 = vcmp.eq.s32.totalorder %v632_v57, %v3826_v5  ;;  %v3260_v5 = vld [vmem:[%s4331_s6 + $0x38] sm:$0xff]  }
 0x207   :  { %v1110_v36 = vmax.f32 %v1094_v2, 0.0  ;;  %vm3936_vm2 = vmpackc.low %vm644_vm1, %vm643_vm0  ;;  %2972 = vmatprep.subr.bf16.mxu1 %v3260_v5 }
 0x208   :  { %2945 = vmatpush3.bf16.msra.mxu0 %v1118_v35  ;;  %v1120_v52 = vpack.c.bf16 %v1112_v47, %v1111_v8  ;;  %2973 = vmatpush3.bf16.msra.mxu1 %v3260_v5 }
 0x209   :  { %v1119_v44 = vpack.c.bf16 %v1110_v36, %v1109_v7 }
 0x20b   :  { %2946 = vmatprep.subr.bf16.mxu0 %v1119_v44 }
 0x20c   :  { %2947 = vmatpush3.bf16.msra.mxu0 %v1119_v44 }
 0x20d   :  { %2948 = vmatprep.subr.bf16.mxu0 %v1120_v52 }
 0x210   :  { %2949 = vmatpush3.bf16.msra.mxu0 %v1120_v52 }
 0x213   :  { %2951 = vmatmul.mubr.msk.bf16.vlgmr.msra.gmra.mrb[36].mxu0 %vm3918_vm14, %v3292_v55 }
 0x214   :  { %2954 = vmatprep.mubr.msk.bf16.mxu0 %vm3922_vm15, %v3292_v55 }
 0x21b   :  { %2955 = vmatmul.mubr.msk.bf16.gmra.mrb[40].mxu0 %vm3936_vm2, %v3292_v55 }
 0x21c   :  { %2990 = vmatprep.mubr.msk.bf16.mxu0 %vm952_vm7, %v3747_v21 }
 0x2e6   :  { %v2952_v35 = vpop.f32.mrb[36].mxu0 }
 0x2e7   :  { %v1155_v48 = vpop.f32.mrb[37].mxu0  ;;  %v1188_v53 = vadd.f32 %v2952_v35, %v3642_v63 }
 0x2e8   :  { %v2953_v20 = vpop.f32.mrb[38].mxu0  ;;  %v1186_v29 = vadd.f32 %v1155_v48, %v3605_v41 }
 0x2e9   :  { %v1189_v22 = vadd.f32 %v2953_v20, %v3627_v58  ;;  %v1158_v56 = vpop.f32.mrb[39].mxu0 }
 0x2ea   :  { %v1187_v61 = vadd.f32 %v1158_v56, %v3607_v42  ;;  %v2576_v42 = vld [vmem:[%s4332_s4 + $0x3] ss:$0 sm:$0xff] }
 0x2eb   :  { %v1195_v59 = vpack.c.bf16 %v1189_v22, %v1188_v53 }
 0x2ec   :  { %v1194_v30 = vpack.c.bf16 %v1187_v61, %v1186_v29 }
 0x2ee   :  { %v2956_v2 = vpop.f32.mrb[40].mxu0  ;;  %2974 = vmatprep.mubr.bf16.mxu1 %v1194_v30 }
 0x2ef   :  { %v1171_v8 = vpop.f32.mrb[41].mxu0  ;;  %2975 = vmatmul.mubr.bf16.vlgmr.msra.gmra.mrb[52].mxu1 %v1195_v59  ;;  %v1192_v7 = vadd.f32 %v2956_v2, %v3692_v4  ;;  %v2586_v4 = vld [vmem:[%s4332_s4 + $0x6] ss:$0 sm:$0xff] }
 0x2f0   :  { %v2957_v47 = vpop.f32.mrb[42].mxu0  ;;  %v1190_v63 = vadd.f32 %v1171_v8, %v3672_v24 }
 0x2f1   :  { %v1193_v36 = vadd.f32 %v2957_v47, %v3680_v37  ;;  %v1174_v52 = vpop.f32.mrb[43].mxu0 }
 0x2f2   :  { %v1191_v58 = vadd.f32 %v1174_v52, %v3650_v11  ;;  %v2588_v11 = vld [vmem:[%s4332_s4 + $0x9] ss:$0 sm:$0xff] }
 0x2f3   :  { %v1197_v44 = vpack.c.bf16 %v1193_v36, %v1192_v7 }
 0x2f4   :  { %v1196_v41 = vpack.c.bf16 %v1191_v58, %v1190_v63 }
 0x2f6   :  { %2978 = vmatprep.mubr.bf16.mxu1 %v1196_v41 }
 0x2f7   :  { %2979 = vmatmul.mubr.bf16.gmra.mrb[56].mxu1 %v1197_v44 }
 0x3c2   :  { %v2976_v15 = vpop.f32.mrb[52].mxu1 }
 0x3c3   :  { %v1313_v40 = vadd.f32 %v2976_v15, %v2576_v42  ;;  %v1304_v37 = vpop.f32.mrb[53].mxu1 }
 0x3c4   :  { %v1305_v49 = vadd.f32 %v2576_v42, %v1304_v37  ;;  %v2977_v38 = vpop.f32.mrb[54].mxu1 }
 0x3c5   :  { %v1345_v24 = vmul.f32 %v2586_v4, %v1313_v40  ;;  %v1316_v32 = vadd.f32 %v2977_v38, %v2576_v42  ;;  %v1307_v57 = vpop.f32.mrb[55].mxu1 }
 0x3c6   :  { %v1343_v19 = vmul.f32 %v2586_v4, %v1305_v49  ;;  %v1308_v5 = vadd.f32 %v2576_v42, %v1307_v57 }
 0x3c7   :  { %v1346_v35 = vmul.f32 %v2586_v4, %v1316_v32  ;;  %v3970_v53 = vadd.f32 %v2588_v11, %v1345_v24 }
 0x3c8   :  { %v3968_v48 = vadd.f32 %v2588_v11, %v1343_v19  ;;  %v1344_v20 = vmul.f32 %v2586_v4, %v1308_v5 }
 0x3c9   :  { %v3972_v22 = vadd.f32 %v2588_v11, %v1346_v35  ;;  %v1369_v36 = vmax.f32 %v3970_v53, 0.0 }
 0x3ca   :  { %v3974_v56 = vadd.f32 %v2588_v11, %v1344_v20  ;;  %v2980_v29 = vpop.f32.mrb[56].mxu1  ;;  %v1367_v30 = vmax.f32 %v3968_v48, 0.0  ;;  %v3261_v20 = vld [vmem:[%s4331_s6 + $0x40] sm:$0xff]  }
 0x3cb   :  { %v1329_v61 = vadd.f32 %v2980_v29, %v2576_v42  ;;  %v1320_v59 = vpop.f32.mrb[57].mxu1  ;;  %v1370_v2 = vmax.f32 %v3972_v22, 0.0  ;;  %v3262_v29 = vld [vmem:[%s4331_s6 + $0x48] sm:$0xff]   ;;  %3030 = vmatprep.subr.bf16.mxu1 %v3261_v20 }
 0x3cc   :  { %v1368_v8 = vmax.f32 %v3974_v56, 0.0  ;;  %v1321_v47 = vadd.f32 %v2576_v42, %v1320_v59  ;;  %v2981_v7 = vpop.f32.mrb[58].mxu1  ;;  %3031 = vmatpush3.bf16.msra.mxu1 %v3261_v20  ;;  %v3264_v59 = vld [vmem:[%s4331_s6 + $0x58] sm:$0xff]  }
 0x3cd   :  { %v1332_v52 = vadd.f32 %v2981_v7, %v2576_v42  ;;  %v1323_v63 = vpop.f32.mrb[59].mxu1  ;;  %v1349_v58 = vmul.f32 %v2586_v4, %v1329_v61  ;;  %v1376_v38 = vpack.c.bf16 %v1370_v2, %v1369_v36  ;;  %3032 = vmatprep.subr.bf16.mxu1 %v3262_v29  ;;  %v3263_v61 = vld [vmem:[%s4331_s6 + $0x50] sm:$0xff]   ;;  %v3266_v7 = vld [vmem:[%s4331_s6 + $0x68] sm:$0xff]  }
 0x3ce   :  { %v1347_v44 = vmul.f32 %v2586_v4, %v1321_v47  ;;  %v1324_v41 = vadd.f32 %v2576_v42, %v1323_v63  ;;  %v1375_v15 = vpack.c.bf16 %v1368_v8, %v1367_v30  ;;  %v3265_v47 = vld [vmem:[%s4331_s6 + $0x60] sm:$0xff]  }
 0x3cf   :  { %v1350_v40 = vmul.f32 %v2586_v4, %v1332_v52  ;;  %v3992_v32 = vadd.f32 %v2588_v11, %v1349_v58  ;;  %v4046_v63 = vld [vmem:[%s4332_s4 + $0x1] ss:$0 sm:$0xff] }
 0x3d0   :  { %v3984_v37 = vadd.f32 %v2588_v11, %v1347_v44  ;;  %v1348_v49 = vmul.f32 %v2586_v4, %v1324_v41  ;;  %2982 = vmatprep.subr.bf16.mxu0 %v1375_v15  ;;  %3033 = vmatpush3.bf16.msra.mxu1 %v3262_v29 }
 0x3d1   :  { %v3990_v24 = vadd.f32 %v2588_v11, %v1350_v40  ;;  %2983 = vmatpush3.bf16.msra.mxu0 %v1375_v15  ;;  %v1373_v5 = vmax.f32 %v3992_v32, 0.0  ;;  %3034 = vmatprep.subr.bf16.mxu1 %v3263_v61 }
 0x3d2   :  { %v3994_v42 = vadd.f32 %v2588_v11, %v1348_v49  ;;  %2984 = vmatprep.subr.bf16.mxu0 %v1376_v38  ;;  %v1371_v57 = vmax.f32 %v3984_v37, 0.0  ;;  %v2634_v37 = vld [vmem:[%s4332_s4 + $0x7] ss:$0 sm:$0xff] }
 0x3d3   :  { %v1374_v19 = vmax.f32 %v3990_v24, 0.0 }
 0x3d4   :  { %v1372_v4 = vmax.f32 %v3994_v42, 0.0  ;;  %3035 = vmatpush3.bf16.msra.mxu1 %v3263_v61 }
 0x3d5   :  { %2985 = vmatpush3.bf16.msra.mxu0 %v1376_v38  ;;  %v1378_v11 = vpack.c.bf16 %v1374_v19, %v1373_v5  ;;  %3036 = vmatprep.subr.bf16.mxu1 %v3264_v59 }
 0x3d6   :  { %v1377_v35 = vpack.c.bf16 %v1372_v4, %v1371_v57 }
 0x3d8   :  { %2986 = vmatprep.subr.bf16.mxu0 %v1377_v35  ;;  %3037 = vmatpush3.bf16.msra.mxu1 %v3264_v59 }
 0x3d9   :  { %2987 = vmatpush3.bf16.msra.mxu0 %v1377_v35  ;;  %3038 = vmatprep.subr.bf16.mxu1 %v3265_v47 }
 0x3da   :  { %2988 = vmatprep.subr.bf16.mxu0 %v1378_v11 }
 0x3dc   :  { %3039 = vmatpush3.bf16.msra.mxu1 %v3265_v47 }
 0x3dd   :  { %2989 = vmatpush3.bf16.msra.mxu0 %v1378_v11  ;;  %3040 = vmatprep.subr.bf16.mxu1 %v3266_v7 }
 0x3e0   :  { %2991 = vmatmul.mubr.msk.bf16.vlgmr.msra.gmra.mrb[44].mxu0 %vm952_vm7, %v3766_v31  ;;  %3041 = vmatpush3.bf16.msra.mxu1 %v3266_v7 }
 0x3e1   :  { %2994 = vmatprep.mubr.msk.bf16.mxu0 %vm952_vm7, %v3768_v16 }
 0x3e8   :  { %2995 = vmatmul.mubr.msk.bf16.gmra.mrb[48].mxu0 %vm952_vm7, %v3784_v43 }
 0x3e9   :  { %2998 = vmatprep.mubr.msk.bf16.mxu0 %vm952_vm7, %v3786_v23 }
 0x3f0   :  { %2999 = vmatmul.mubr.msk.bf16.gmra.mrb[52].mxu0 %vm952_vm7, %v3803_v50 }
 0x3f1   :  { %3002 = vmatprep.mubr.msk.bf16.mxu0 %vm952_vm7, %v3805_v51 }
 0x3f8   :  { %3003 = vmatmul.mubr.msk.bf16.gmra.mrb[56].mxu0 %vm952_vm7, %v3817_v54 }
 0x3f9   :  { %3022 = vmatprep.mubr.msk.bf16.mxu0 %vm3832_vm10, %v3292_v55 }
 0x4b3   :  { %v2992_v52 = vpop.f32.mrb[44].mxu0 }
 0x4b4   :  { %v1422_v58 = vadd.f32 %v2992_v52, %v3861_v62  ;;  %v1413_v44 = vpop.f32.mrb[45].mxu0 }
 0x4b5   :  { %v1414_v41 = vadd.f32 %v1413_v44, %v3857_v45  ;;  %v2993_v15 = vpop.f32.mrb[46].mxu0 }
 0x4b6   :  { %v1486_v40 = vadd.f32 %v4046_v63, %v1422_v58  ;;  %v1425_v49 = vadd.f32 %v2993_v15, %v3863_v9  ;;  %v1416_v38 = vpop.f32.mrb[47].mxu0 }
 0x4b7   :  { %v1484_v35 = vadd.f32 %v4046_v63, %v1414_v41  ;;  %v1417_v11 = vadd.f32 %v1416_v38, %v3859_v60 }
 0x4b8   :  { %v1487_v20 = vadd.f32 %v4046_v63, %v1425_v49  ;;  %v1502_v61 = vmax.f32 %v1486_v40, 0.0 }
 0x4b9   :  { %v1485_v29 = vadd.f32 %v4046_v63, %v1417_v11  ;;  %v1500_v62 = vmax.f32 %v1484_v35, 0.0 }
 0x4ba   :  { %v1503_v59 = vmax.f32 %v1487_v20, 0.0 }
 0x4bb   :  { %v1501_v47 = vmax.f32 %v1485_v29, 0.0  ;;  %v2996_v7 = vpop.f32.mrb[48].mxu0 }
 0x4bc   :  { %v1438_v45 = vadd.f32 %v2996_v7, %v3869_v17  ;;  %v1429_v52 = vpop.f32.mrb[49].mxu0  ;;  %v1517_v58 = vpack.c.bf16 %v1503_v59, %v1502_v61 }
 0x4bd   :  { %v1430_v9 = vadd.f32 %v1429_v52, %v3865_v13  ;;  %v2997_v44 = vpop.f32.mrb[50].mxu0  ;;  %v1516_v15 = vpack.c.bf16 %v1501_v47, %v1500_v62 }
 0x4be   :  { %v1490_v41 = vadd.f32 %v4046_v63, %v1438_v45  ;;  %v1441_v60 = vadd.f32 %v2997_v44, %v3871_v28  ;;  %v1432_v49 = vpop.f32.mrb[51].mxu0 }
 0x4bf   :  { %v1488_v38 = vadd.f32 %v4046_v63, %v1430_v9  ;;  %v1433_v40 = vadd.f32 %v1432_v49, %v3867_v3  ;;  %3006 = vmatprep.subr.bf16.mxu0 %v1516_v15 }
 0x4c0   :  { %v1491_v35 = vadd.f32 %v4046_v63, %v1441_v60  ;;  %3007 = vmatpush3.bf16.msra.mxu0 %v1516_v15  ;;  %v1506_v11 = vmax.f32 %v1490_v41, 0.0 }
 0x4c1   :  { %v1489_v17 = vadd.f32 %v4046_v63, %v1433_v40  ;;  %3008 = vmatprep.subr.bf16.mxu0 %v1517_v58  ;;  %v1504_v20 = vmax.f32 %v1488_v38, 0.0 }
 0x4c2   :  { %v1507_v13 = vmax.f32 %v1491_v35, 0.0 }
 0x4c3   :  { %v1505_v29 = vmax.f32 %v1489_v17, 0.0  ;;  %v3000_v61 = vpop.f32.mrb[52].mxu0 }
 0x4c4   :  { %v1454_v59 = vadd.f32 %v3000_v61, %v3886_v18  ;;  %v1445_v28 = vpop.f32.mrb[53].mxu0  ;;  %3009 = vmatpush3.bf16.msra.mxu0 %v1517_v58  ;;  %v1519_v62 = vpack.c.bf16 %v1507_v13, %v1506_v11 }
 0x4c5   :  { %v1446_v47 = vadd.f32 %v1445_v28, %v3873_v26  ;;  %v3001_v3 = vpop.f32.mrb[54].mxu0  ;;  %v1518_v7 = vpack.c.bf16 %v1505_v29, %v1504_v20 }
 0x4c6   :  { %v1494_v45 = vadd.f32 %v4046_v63, %v1454_v59  ;;  %v1457_v52 = vadd.f32 %v3001_v3, %v3888_v0  ;;  %v1448_v9 = vpop.f32.mrb[55].mxu0 }
 0x4c7   :  { %v1492_v44 = vadd.f32 %v4046_v63, %v1446_v47  ;;  %v1449_v15 = vadd.f32 %v1448_v9, %v3880_v39  ;;  %3010 = vmatprep.subr.bf16.mxu0 %v1518_v7 }
 0x4c8   :  { %v1495_v41 = vadd.f32 %v4046_v63, %v1457_v52  ;;  %3011 = vmatpush3.bf16.msra.mxu0 %v1518_v7  ;;  %v1510_v58 = vmax.f32 %v1494_v45, 0.0 }
 0x4c9   :  { %v1493_v18 = vadd.f32 %v4046_v63, %v1449_v15  ;;  %3012 = vmatprep.subr.bf16.mxu0 %v1519_v62  ;;  %v1508_v60 = vmax.f32 %v1492_v44, 0.0 }
 0x4ca   :  { %v1511_v26 = vmax.f32 %v1495_v41, 0.0 }
 0x4cb   :  { %v1509_v49 = vmax.f32 %v1493_v18, 0.0  ;;  %v3004_v38 = vpop.f32.mrb[56].mxu0 }
 0x4cc   :  { %v1470_v40 = vadd.f32 %v3004_v38, %v3902_v14  ;;  %v1461_v0 = vpop.f32.mrb[57].mxu0  ;;  %3013 = vmatpush3.bf16.msra.mxu0 %v1519_v62  ;;  %v1521_v35 = vpack.c.bf16 %v1511_v26, %v1510_v58 }
 0x4cd   :  { %v1462_v17 = vadd.f32 %v1461_v0, %v3894_v34  ;;  %v3005_v39 = vpop.f32.mrb[58].mxu0  ;;  %v1520_v11 = vpack.c.bf16 %v1509_v49, %v1508_v60 }
 0x4ce   :  { %v1498_v13 = vadd.f32 %v4046_v63, %v1470_v40  ;;  %v1473_v20 = vadd.f32 %v3005_v39, %v3904_v33  ;;  %v1464_v29 = vpop.f32.mrb[59].mxu0  ;;  %v3268_v33 = vld [vmem:[%s4331_s6 + $0x78] sm:$0xff]  }
 0x4cf   :  { %v1496_v61 = vadd.f32 %v4046_v63, %v1462_v17  ;;  %v1465_v59 = vadd.f32 %v1464_v29, %v3896_v12  ;;  %3014 = vmatprep.subr.bf16.mxu0 %v1520_v11  ;;  %v3267_v12 = vld [vmem:[%s4331_s6 + $0x70] sm:$0xff]  }
 0x4d0   :  { %v1499_v28 = vadd.f32 %v4046_v63, %v1473_v20  ;;  %3015 = vmatpush3.bf16.msra.mxu0 %v1520_v11  ;;  %v1514_v62 = vmax.f32 %v1498_v13, 0.0  ;;  %3042 = vmatprep.subr.bf16.mxu1 %v3267_v12 }
 0x4d1   :  { %v1497_v14 = vadd.f32 %v4046_v63, %v1465_v59  ;;  %3016 = vmatprep.subr.bf16.mxu0 %v1521_v35  ;;  %v1512_v47 = vmax.f32 %v1496_v61, 0.0  ;;  %3043 = vmatpush3.bf16.msra.mxu1 %v3267_v12 }
 0x4d2   :  { %v1515_v34 = vmax.f32 %v1499_v28, 0.0  ;;  %3044 = vmatprep.subr.bf16.mxu1 %v3268_v33 }
 0x4d3   :  { %v1513_v3 = vmax.f32 %v1497_v14, 0.0 }
 0x4d4   :  { %3017 = vmatpush3.bf16.msra.mxu0 %v1521_v35  ;;  %v1523_v7 = vpack.c.bf16 %v1515_v34, %v1514_v62 }
 0x4d5   :  { %v1522_v45 = vpack.c.bf16 %v1513_v3, %v1512_v47  ;;  %3045 = vmatpush3.bf16.msra.mxu1 %v3268_v33 }
 0x4d7   :  { %3018 = vmatprep.subr.bf16.mxu0 %v1522_v45 }
 0x4d8   :  { %3019 = vmatpush3.bf16.msra.mxu0 %v1522_v45 }
 0x4d9   :  { %3020 = vmatprep.subr.bf16.mxu0 %v1523_v7 }
 0x4dc   :  { %3021 = vmatpush3.bf16.msra.mxu0 %v1523_v7 }
 0x4df   :  { %3023 = vmatmul.mubr.msk.bf16.vlgmr.msra.gmra.mrb[60].mxu0 %vm3918_vm14, %v3292_v55 }
 0x4e0   :  { %3026 = vmatprep.mubr.msk.bf16.mxu0 %vm3922_vm15, %v3292_v55 }
 0x4e7   :  { %3027 = vmatmul.mubr.msk.bf16.gmra.mrb[64].mxu0 %vm3936_vm2, %v3292_v55 }
 0x4e8   :  { %3094 = vmatprep.mubr.msk.bf16.mxu0 %vm3832_vm10, %v3292_v55 }
 0x5b2   :  { %v3024_v63 = vpop.f32.mrb[60].mxu0 }
 0x5b3   :  { %v1558_v52 = vpop.f32.mrb[61].mxu0  ;;  %v1591_v44 = vadd.f32 %v3024_v63, %v1369_v36  ;;  %v2624_v36 = vld [vmem:[%s4332_s4 + $0x4] ss:$0 sm:$0xff] }
 0x5b4   :  { %v3025_v9 = vpop.f32.mrb[62].mxu0  ;;  %v1589_v41 = vadd.f32 %v1558_v52, %v1367_v30 }
 0x5b5   :  { %v1592_v1 = vadd.f32 %v3025_v9, %v1370_v2  ;;  %v1561_v15 = vpop.f32.mrb[63].mxu0 }
 0x5b6   :  { %v1590_v18 = vadd.f32 %v1561_v15, %v1368_v8 }
 0x5b7   :  { %v1598_v58 = vpack.c.bf16 %v1592_v1, %v1591_v44 }
 0x5b8   :  { %v1597_v26 = vpack.c.bf16 %v1590_v18, %v1589_v41 }
 0x5ba   :  { %v3028_v60 = vpop.f32.mrb[64].mxu0  ;;  %3046 = vmatprep.mubr.bf16.mxu1 %v1597_v26 }
 0x5bb   :  { %v1574_v49 = vpop.f32.mrb[65].mxu0  ;;  %3047 = vmatmul.mubr.bf16.vlgmr.msra.gmra.mrb[60].mxu1 %v1598_v58  ;;  %v1595_v53 = vadd.f32 %v3028_v60, %v1373_v5  ;;  %v2636_v5 = vld [vmem:[%s4332_s4 + $0xa] ss:$0 sm:$0xff] }
 0x5bc   :  { %v3029_v38 = vpop.f32.mrb[66].mxu0  ;;  %v1593_v48 = vadd.f32 %v1574_v49, %v1371_v57 }
 0x5bd   :  { %v1596_v22 = vadd.f32 %v3029_v38, %v1374_v19  ;;  %v1577_v2 = vpop.f32.mrb[67].mxu0 }
 0x5be   :  { %v1594_v56 = vadd.f32 %v1577_v2, %v1372_v4 }
 0x5bf   :  { %v1600_v30 = vpack.c.bf16 %v1596_v22, %v1595_v53 }
 0x5c0   :  { %v1599_v8 = vpack.c.bf16 %v1594_v56, %v1593_v48 }
 0x5c2   :  { %3050 = vmatprep.mubr.bf16.mxu1 %v1599_v8 }
 0x5c3   :  { %3051 = vmatmul.mubr.bf16.gmra.mrb[64].mxu1 %v1600_v30 }
 0x5c4   :  { %3062 = vmatprep.mubr.msk.bf16.mxu1 %vm952_vm7, %v3747_v21 }
 0x68e   :  { %v3048_v24 = vpop.f32.mrb[60].mxu1 }
 0x68f   :  { %v1717_v32 = vadd.f32 %v3048_v24, %v2624_v36  ;;  %v1708_v57 = vpop.f32.mrb[61].mxu1 }
 0x690   :  { %v1709_v42 = vadd.f32 %v2624_v36, %v1708_v57  ;;  %v3049_v19 = vpop.f32.mrb[62].mxu1 }
 0x691   :  { %v1749_v4 = vmul.f32 %v2634_v37, %v1717_v32  ;;  %v1720_v40 = vadd.f32 %v3049_v19, %v2624_v36  ;;  %v1711_v21 = vpop.f32.mrb[63].mxu1 }
 0x692   :  { %v1747_v0 = vmul.f32 %v2634_v37, %v1709_v42  ;;  %v1712_v35 = vadd.f32 %v2624_v36, %v1711_v21 }
 0x693   :  { %v1750_v17 = vmul.f32 %v2634_v37, %v1720_v40  ;;  %v4127_v13 = vadd.f32 %v2636_v5, %v1749_v4 }
 0x694   :  { %v4125_v39 = vadd.f32 %v2636_v5, %v1747_v0  ;;  %v1748_v11 = vmul.f32 %v2634_v37, %v1712_v35 }
 0x695   :  { %v4129_v20 = vadd.f32 %v2636_v5, %v1750_v17  ;;  %v1773_v7 = vmax.f32 %v4127_v13, 0.0 }
 0x696   :  { %v4131_v29 = vadd.f32 %v2636_v5, %v1748_v11  ;;  %v3052_v61 = vpop.f32.mrb[64].mxu1  ;;  %v1771_v14 = vmax.f32 %v4125_v39, 0.0 }
 0x697   :  { %v1733_v59 = vadd.f32 %v3052_v61, %v2624_v36  ;;  %v1724_v28 = vpop.f32.mrb[65].mxu1  ;;  %v1774_v62 = vmax.f32 %v4129_v20, 0.0 }
 0x698   :  { %v1772_v34 = vmax.f32 %v4131_v29, 0.0  ;;  %v1725_v47 = vadd.f32 %v2624_v36, %v1724_v28  ;;  %v3053_v3 = vpop.f32.mrb[66].mxu1 }
 0x699   :  { %v1736_v45 = vadd.f32 %v3053_v3, %v2624_v36  ;;  %v1727_v12 = vpop.f32.mrb[67].mxu1  ;;  %v1753_v33 = vmul.f32 %v2634_v37, %v1733_v59  ;;  %v1780_v41 = vpack.c.bf16 %v1774_v62, %v1773_v7 }
 0x69a   :  { %v1751_v63 = vmul.f32 %v2634_v37, %v1725_v47  ;;  %v1728_v52 = vadd.f32 %v2624_v36, %v1727_v12  ;;  %v1779_v9 = vpack.c.bf16 %v1772_v34, %v1771_v14 }
 0x69b   :  { %v1754_v44 = vmul.f32 %v2634_v37, %v1736_v45  ;;  %v4149_v58 = vadd.f32 %v2636_v5, %v1753_v33 }
 0x69c   :  { %v4141_v1 = vadd.f32 %v2636_v5, %v1751_v63  ;;  %v1752_v15 = vmul.f32 %v2634_v37, %v1728_v52  ;;  %3054 = vmatprep.subr.bf16.mxu1 %v1779_v9 }
 0x69d   :  { %v4147_v18 = vadd.f32 %v2636_v5, %v1754_v44  ;;  %3055 = vmatpush3.bf16.msra.mxu1 %v1779_v9  ;;  %v1777_v53 = vmax.f32 %v4149_v58, 0.0 }
 0x69e   :  { %v4151_v26 = vadd.f32 %v2636_v5, %v1752_v15  ;;  %3056 = vmatprep.subr.bf16.mxu1 %v1780_v41  ;;  %v1775_v60 = vmax.f32 %v4141_v1, 0.0 }
 0x69f   :  { %v1778_v49 = vmax.f32 %v4147_v18, 0.0  ;;  %v2682_v18 = vld [vmem:[%s4332_s4 + $0x8] ss:$0 sm:$0xff] }
 0x6a0   :  { %v1776_v38 = vmax.f32 %v4151_v26, 0.0 }
 0x6a1   :  { %3057 = vmatpush3.bf16.msra.mxu1 %v1780_v41  ;;  %v1782_v2 = vpack.c.bf16 %v1778_v49, %v1777_v53 }
 0x6a2   :  { %v1781_v22 = vpack.c.bf16 %v1776_v38, %v1775_v60 }
 0x6a4   :  { %3058 = vmatprep.subr.bf16.mxu1 %v1781_v22 }
 0x6a5   :  { %3059 = vmatpush3.bf16.msra.mxu1 %v1781_v22 }
 0x6a6   :  { %3060 = vmatprep.subr.bf16.mxu1 %v1782_v2 }
 0x6a9   :  { %3061 = vmatpush3.bf16.msra.mxu1 %v1782_v2 }
 0x6ac   :  { %3063 = vmatmul.mubr.msk.bf16.vlgmr.msra.gmra.mrb[20].mxu1 %vm952_vm7, %v3766_v31  ;;  %v3269_v31 = vld [vmem:[%s4331_s6 + $0x80] sm:$0xff]  }
 0x6ad   :  { %3066 = vmatprep.mubr.msk.bf16.mxu1 %vm952_vm7, %v3768_v16  ;;  %v3270_v16 = vld [vmem:[%s4331_s6 + $0x88] sm:$0xff]   ;;  %3102 = vmatprep.subr.bf16.mxu1 %v3269_v31 }
 0x6ae   :  { %3103 = vmatpush3.bf16.msra.mxu1 %v3269_v31 }
 0x6af   :  { %3104 = vmatprep.subr.bf16.mxu1 %v3270_v16 }
 0x6b2   :  { %3105 = vmatpush3.bf16.msra.mxu1 %v3270_v16 }
 0x6b4   :  { %3067 = vmatmul.mubr.msk.bf16.gmra.mrb[24].mxu1 %vm952_vm7, %v3784_v43  ;;  %v3271_v43 = vld [vmem:[%s4331_s6 + $0x90] sm:$0xff]  }
 0x6b5   :  { %3070 = vmatprep.mubr.msk.bf16.mxu1 %vm952_vm7, %v3786_v23  ;;  %3106 = vmatprep.subr.bf16.mxu1 %v3271_v43  ;;  %v3272_v23 = vld [vmem:[%s4331_s6 + $0x98] sm:$0xff]  }
 0x6b6   :  { %3107 = vmatpush3.bf16.msra.mxu1 %v3271_v43 }
 0x6b7   :  { %3108 = vmatprep.subr.bf16.mxu1 %v3272_v23 }
 0x6ba   :  { %3109 = vmatpush3.bf16.msra.mxu1 %v3272_v23 }
 0x6bc   :  { %3071 = vmatmul.mubr.msk.bf16.gmra.mrb[28].mxu1 %vm952_vm7, %v3803_v50  ;;  %v3273_v50 = vld [vmem:[%s4331_s6 + $0xa0] sm:$0xff]  }
 0x6bd   :  { %3074 = vmatprep.mubr.msk.bf16.mxu1 %vm952_vm7, %v3805_v51  ;;  %3110 = vmatprep.subr.bf16.mxu1 %v3273_v50  ;;  %v3274_v51 = vld [vmem:[%s4331_s6 + $0xa8] sm:$0xff]  }
 0x6be   :  { %3111 = vmatpush3.bf16.msra.mxu1 %v3273_v50 }
 0x6bf   :  { %3112 = vmatprep.subr.bf16.mxu1 %v3274_v51 }
 0x6c2   :  { %3113 = vmatpush3.bf16.msra.mxu1 %v3274_v51 }
 0x6c4   :  { %3075 = vmatmul.mubr.msk.bf16.gmra.mrb[32].mxu1 %vm952_vm7, %v3817_v54  ;;  %v2646_v54 = vld [vmem:[%s4332_s4 + $0x2] ss:$0 sm:$0xff] }
 0x77f   :  { %v3064_v48 = vpop.f32.mrb[20].mxu1 }
 0x780   :  { %v1890_v56 = vadd.f32 %v3064_v48, %v2646_v54  ;;  %v1817_v30 = vpop.f32.mrb[21].mxu1 }
 0x781   :  { %v1888_v8 = vadd.f32 %v2646_v54, %v1817_v30  ;;  %v3065_v36 = vpop.f32.mrb[22].mxu1 }
 0x782   :  { %v1891_v24 = vadd.f32 %v3065_v36, %v2646_v54  ;;  %v1820_v37 = vpop.f32.mrb[23].mxu1  ;;  %v1906_v57 = vmax.f32 %v1890_v56, 0.0 }
 0x783   :  { %v1889_v32 = vadd.f32 %v2646_v54, %v1820_v37  ;;  %v1904_v19 = vmax.f32 %v1888_v8, 0.0 }
 0x784   :  { %v1907_v42 = vmax.f32 %v1891_v24, 0.0 }
 0x785   :  { %v1905_v4 = vmax.f32 %v1889_v32, 0.0 }
 0x786   :  { %v1921_v5 = vpack.c.bf16 %v1907_v42, %v1906_v57 }
 0x787   :  { %v1920_v40 = vpack.c.bf16 %v1905_v4, %v1904_v19  ;;  %v3068_v21 = vpop.f32.mrb[24].mxu1 }
 0x788   :  { %v1894_v0 = vadd.f32 %v3068_v21, %v2646_v54  ;;  %v1833_v35 = vpop.f32.mrb[25].mxu1 }
 0x789   :  { %v1892_v17 = vadd.f32 %v2646_v54, %v1833_v35  ;;  %v3069_v11 = vpop.f32.mrb[26].mxu1  ;;  %3078 = vmatprep.subr.bf16.mxu0 %v1920_v40 }
 0x78a   :  { %v1895_v61 = vadd.f32 %v3069_v11, %v2646_v54  ;;  %v1836_v59 = vpop.f32.mrb[27].mxu1  ;;  %3079 = vmatpush3.bf16.msra.mxu0 %v1920_v40  ;;  %v1910_v47 = vmax.f32 %v1894_v0, 0.0  ;;  %v3276_v0 = vld [vmem:[%s4331_s6 + $0xb8] sm:$0xff]  }
 0x78b   :  { %v1893_v28 = vadd.f32 %v2646_v54, %v1836_v59  ;;  %3080 = vmatprep.subr.bf16.mxu0 %v1921_v5  ;;  %v1908_v45 = vmax.f32 %v1892_v17, 0.0 }
 0x78c   :  { %v1911_v3 = vmax.f32 %v1895_v61, 0.0 }
 0x78d   :  { %v1909_v12 = vmax.f32 %v1893_v28, 0.0 }
 0x78e   :  { %v1923_v33 = vpack.c.bf16 %v1911_v3, %v1910_v47  ;;  %3081 = vmatpush3.bf16.msra.mxu0 %v1921_v5 }
 0x78f   :  { %v1922_v63 = vpack.c.bf16 %v1909_v12, %v1908_v45  ;;  %v3072_v52 = vpop.f32.mrb[28].mxu1 }
 0x790   :  { %v1898_v9 = vadd.f32 %v3072_v52, %v2646_v54  ;;  %v1849_v44 = vpop.f32.mrb[29].mxu1 }
 0x791   :  { %v1896_v15 = vadd.f32 %v2646_v54, %v1849_v44  ;;  %v3073_v41 = vpop.f32.mrb[30].mxu1  ;;  %3082 = vmatprep.subr.bf16.mxu0 %v1922_v63 }
 0x792   :  { %v1899_v22 = vadd.f32 %v3073_v41, %v2646_v54  ;;  %v1852_v2 = vpop.f32.mrb[31].mxu1  ;;  %3083 = vmatpush3.bf16.msra.mxu0 %v1922_v63  ;;  %v1914_v16 = vmax.f32 %v1898_v9, 0.0 }
 0x793   :  { %v1897_v31 = vadd.f32 %v2646_v54, %v1852_v2  ;;  %3084 = vmatprep.subr.bf16.mxu0 %v1923_v33  ;;  %v1912_v23 = vmax.f32 %v1896_v15, 0.0 }
 0x794   :  { %v1915_v43 = vmax.f32 %v1899_v22, 0.0 }
 0x795   :  { %v1913_v50 = vmax.f32 %v1897_v31, 0.0 }
 0x796   :  { %v1925_v51 = vpack.c.bf16 %v1915_v43, %v1914_v16  ;;  %3085 = vmatpush3.bf16.msra.mxu0 %v1923_v33 }
 0x797   :  { %v1924_v48 = vpack.c.bf16 %v1913_v50, %v1912_v23  ;;  %v3076_v56 = vpop.f32.mrb[32].mxu1 }
 0x798   :  { %v1902_v30 = vadd.f32 %v3076_v56, %v2646_v54  ;;  %v1865_v8 = vpop.f32.mrb[33].mxu1 }
 0x799   :  { %v1900_v36 = vadd.f32 %v2646_v54, %v1865_v8  ;;  %v3077_v24 = vpop.f32.mrb[34].mxu1  ;;  %3086 = vmatprep.subr.bf16.mxu0 %v1924_v48 }
 0x79a   :  { %v1903_v37 = vadd.f32 %v3077_v24, %v2646_v54  ;;  %v1868_v32 = vpop.f32.mrb[35].mxu1  ;;  %3087 = vmatpush3.bf16.msra.mxu0 %v1924_v48  ;;  %v1918_v42 = vmax.f32 %v1902_v30, 0.0 }
 0x79b   :  { %v1901_v57 = vadd.f32 %v2646_v54, %v1868_v32  ;;  %3088 = vmatprep.subr.bf16.mxu0 %v1925_v51  ;;  %v1916_v4 = vmax.f32 %v1900_v36, 0.0  ;;  %v3275_v54 = vld [vmem:[%s4331_s6 + $0xb0] sm:$0xff]  }
 0x79c   :  { %v1919_v19 = vmax.f32 %v1903_v37, 0.0  ;;  %3114 = vmatprep.subr.bf16.mxu1 %v3275_v54 }
 0x79d   :  { %v1917_v5 = vmax.f32 %v1901_v57, 0.0  ;;  %3115 = vmatpush3.bf16.msra.mxu1 %v3275_v54 }
 0x79e   :  { %v1927_v40 = vpack.c.bf16 %v1919_v19, %v1918_v42  ;;  %3089 = vmatpush3.bf16.msra.mxu0 %v1925_v51  ;;  %3116 = vmatprep.subr.bf16.mxu1 %v3276_v0 }
 0x79f   :  { %v1926_v21 = vpack.c.bf16 %v1917_v5, %v1916_v4 }
 0x7a1   :  { %3090 = vmatprep.subr.bf16.mxu0 %v1926_v21  ;;  %3117 = vmatpush3.bf16.msra.mxu1 %v3276_v0  ;;  %v2534_v0 = vld [vmem:[%s4330_s3 + $0x1] ss:$0 sm:$0xff] }
 0x7a2   :  { %3091 = vmatpush3.bf16.msra.mxu0 %v1926_v21  ;;  %3158 = vmatprep.subr.bf16.mxu1 %v3291_v25  ;;  %vm669_vm5 = vcmp.eq.s32.totalorder %v3358_v6, %v2534_v0  ;;  %v3278_v6 = vld [vmem:[%s4333_s7 + $0x8] sm:$0xff]  }
 0x7a3   :  { %3092 = vmatprep.subr.bf16.mxu0 %v1927_v40 }
 0x7a6   :  { %3093 = vmatpush3.bf16.msra.mxu0 %v1927_v40 }
 0x7a7   :  { %3126 = vmatprep.subr.bf16.mxu0 %v3291_v25 }
 0x7a9   :  { %3095 = vmatmul.mubr.msk.bf16.vlgmr.msra.gmra.mrb[68].mxu0 %vm3918_vm14, %v3292_v55 }
 0x7aa   :  { %3098 = vmatprep.mubr.msk.bf16.mxu0 %vm3922_vm15, %v3292_v55 }
 0x7b1   :  { %3099 = vmatmul.mubr.msk.bf16.gmra.mrb[72].mxu0 %vm3936_vm2, %v3292_v55 }
 0x7b2   :  { %3134 = vmatprep.mubr.msk.bf16.mxu0 %vm3293_vm3, %v3291_v25 }
 0x87c   :  { %v3096_v27 = vpop.f32.mrb[68].mxu0 }
 0x87d   :  { %v1962_v46 = vpop.f32.mrb[69].mxu0  ;;  %v1995_v55 = vadd.f32 %v3096_v27, %v1773_v7  ;;  %v2672_v7 = vld [vmem:[%s4332_s4 + $0x5] ss:$0 sm:$0xff] }
 0x87e   :  { %v3097_v35 = vpop.f32.mrb[70].mxu0  ;;  %v1993_v11 = vadd.f32 %v1962_v46, %v1771_v14 }
 0x87f   :  { %v1996_v10 = vadd.f32 %v3097_v35, %v1774_v62  ;;  %v1965_v17 = vpop.f32.mrb[71].mxu0 }
 0x880   :  { %v1994_v61 = vadd.f32 %v1965_v17, %v1772_v34 }
 0x881   :  { %v2002_v59 = vpack.c.bf16 %v1996_v10, %v1995_v55 }
 0x882   :  { %v2001_v28 = vpack.c.bf16 %v1994_v61, %v1993_v11  ;;  %v2535_v11 = vsel %vm669_vm5, 1.0, %v3291_v25 }
 0x883   :  { %v672_v61 = vpack.c.bf16 %v2535_v11, %v2535_v11 }
 0x884   :  { %v3100_v47 = vpop.f32.mrb[72].mxu0  ;;  %3118 = vmatprep.mubr.bf16.mxu1 %v2001_v28  ;;  %v3279_v28 = vld [vmem:[%s4333_s7 + $0x10] sm:$0xff]  }
 0x885   :  { %v1978_v3 = vpop.f32.mrb[73].mxu0  ;;  %3119 = vmatmul.mubr.bf16.vlgmr.msra.gmra.mrb[68].mxu1 %v2002_v59  ;;  %v1999_v13 = vadd.f32 %v3100_v47, %v1777_v53  ;;  %v3277_v59 = vld [vmem:[%s4333_s7] sm:$0xff]   ;;  %v3280_v47 = vld [vmem:[%s4333_s7 + $0x18] sm:$0xff]  }
 0x886   :  { %v3101_v45 = vpop.f32.mrb[74].mxu0  ;;  %v1997_v39 = vadd.f32 %v1978_v3, %v1775_v60  ;;  %v2684_v60 = vld [vmem:[%s4332_s4 + $0xb] ss:$0 sm:$0xff]  ;;  %v3281_v3 = vld [vmem:[%s4333_s7 + $0x20] sm:$0xff]  }
 0x887   :  { %v2000_v20 = vadd.f32 %v3101_v45, %v1778_v49  ;;  %v1981_v62 = vpop.f32.mrb[75].mxu0  ;;  %v3282_v45 = vld [vmem:[%s4333_s7 + $0x28] sm:$0xff]  }
 0x888   :  { %v1998_v29 = vadd.f32 %v1981_v62, %v1776_v38  ;;  %v3285_v62 = vld [vmem:[%s4333_s7 + $0x40] sm:$0xff]  }
 0x889   :  { %v2004_v14 = vpack.c.bf16 %v2000_v20, %v1999_v13  ;;  %v3283_v13 = vld [vmem:[%s4333_s7 + $0x30] sm:$0xff]   ;;  %v3284_v20 = vld [vmem:[%s4333_s7 + $0x38] sm:$0xff]   ;;  %3159 = vmatpush3.bf16.msra.mxu1 %v3285_v62 }
 0x88a   :  { %v2003_v34 = vpack.c.bf16 %v1998_v29, %v1997_v39  ;;  %3160 = vmatprep.subr.bf16.mxu1 %v3291_v25  ;;  %v2687_v39 = vld [vmem:[%s4332_s4 + $0xc] ss:$0 sm:$0xff] }
 0x88c   :  { %3122 = vmatprep.mubr.bf16.mxu1 %v2003_v34 }
 0x88d   :  { %3123 = vmatmul.mubr.bf16.gmra.mrb[72].mxu1 %v2004_v14  ;;  %v2689_v14 = vld [vmem:[%s4332_s4 + $0xd] ss:$0 sm:$0xff] }
 0x88e   :  { %3166 = vmatprep.mubr.msk.bf16.mxu1 %vm3293_vm3, %v3291_v25 }
 0x958   :  { %v3120_v1 = vpop.f32.mrb[68].mxu1 }
 0x959   :  { %v2121_v58 = vadd.f32 %v3120_v1, %v2672_v7  ;;  %v2112_v26 = vpop.f32.mrb[69].mxu1 }
 0x95a   :  { %v2113_v49 = vadd.f32 %v2672_v7, %v2112_v26  ;;  %v3121_v38 = vpop.f32.mrb[70].mxu1 }
 0x95b   :  { %v2153_v53 = vmul.f32 %v2682_v18, %v2121_v58  ;;  %v2124_v12 = vadd.f32 %v3121_v38, %v2672_v7  ;;  %v2115_v33 = vpop.f32.mrb[71].mxu1  ;;  %v3288_v38 = vld [vmem:[%s4333_s7 + $0x58] sm:$0xff]  }
 0x95c   :  { %v2151_v63 = vmul.f32 %v2682_v18, %v2113_v49  ;;  %v2116_v52 = vadd.f32 %v2672_v7, %v2115_v33  ;;  %v3287_v49 = vld [vmem:[%s4333_s7 + $0x50] sm:$0xff]  }
 0x95d   :  { %v2169_v9 = vadd.f32 %v2684_v60, %v2153_v53  ;;  %v2154_v44 = vmul.f32 %v2682_v18, %v2124_v12  ;;  %v2691_v53 = vld [vmem:[%s4332_s4 + $0xe] ss:$0 sm:$0xff] }
 0x95e   :  { %v2167_v15 = vadd.f32 %v2684_v60, %v2151_v63  ;;  %v2152_v41 = vmul.f32 %v2682_v18, %v2116_v52  ;;  %v2701_v52 = vld [vmem:[%s4332_s4 + $0xf] ss:$0 sm:$0xff] }
 0x95f   :  { %v2170_v22 = vadd.f32 %v2684_v60, %v2154_v44  ;;  %v2177_v16 = vmax.f32 %v2169_v9, 0.0 }
 0x960   :  { %v2168_v2 = vadd.f32 %v2684_v60, %v2152_v41  ;;  %v3124_v31 = vpop.f32.mrb[72].mxu1  ;;  %v2175_v51 = vmax.f32 %v2167_v15, 0.0 }
 0x961   :  { %v2178_v43 = vmax.f32 %v2170_v22, 0.0  ;;  %v2137_v23 = vadd.f32 %v3124_v31, %v2672_v7  ;;  %v2128_v50 = vpop.f32.mrb[73].mxu1  ;;  %v2705_v31 = vld [vmem:[%s4332_s4 + $0x11] ss:$0 sm:$0xff] }
 0x962   :  { %v2176_v48 = vmax.f32 %v2168_v2, 0.0  ;;  %v2129_v56 = vadd.f32 %v2672_v7, %v2128_v50  ;;  %v3125_v30 = vpop.f32.mrb[74].mxu1 }
 0x963   :  { %v2184_v8 = vpack.c.bf16 %v2178_v43, %v2177_v16  ;;  %v2157_v36 = vmul.f32 %v2682_v18, %v2137_v23  ;;  %v2140_v24 = vadd.f32 %v3125_v30, %v2672_v7  ;;  %v2131_v37 = vpop.f32.mrb[75].mxu1 }
 0x964   :  { %v2183_v32 = vpack.c.bf16 %v2176_v48, %v2175_v51  ;;  %v2155_v57 = vmul.f32 %v2682_v18, %v2129_v56  ;;  %v2132_v42 = vadd.f32 %v2672_v7, %v2131_v37 }
 0x965   :  { %v2173_v19 = vadd.f32 %v2684_v60, %v2157_v36  ;;  %v2158_v4 = vmul.f32 %v2682_v18, %v2140_v24 }
 0x966   :  { %v2171_v5 = vadd.f32 %v2684_v60, %v2155_v57  ;;  %v2156_v40 = vmul.f32 %v2682_v18, %v2132_v42  ;;  %3127 = vmatpush3.bf16.msra.mxu0 %v2183_v32 }
 0x967   :  { %v2174_v21 = vadd.f32 %v2684_v60, %v2158_v4  ;;  %3128 = vmatprep.subr.bf16.mxu0 %v3291_v25  ;;  %v2181_v27 = vmax.f32 %v2173_v19, 0.0 }
 0x968   :  { %v2172_v54 = vadd.f32 %v2684_v60, %v2156_v40  ;;  %v2179_v35 = vmax.f32 %v2171_v5, 0.0  ;;  %v3286_v60 = vld [vmem:[%s4333_s7 + $0x48] sm:$0xff]  }
 0x969   :  { %v2182_v46 = vmax.f32 %v2174_v21, 0.0  ;;  %3161 = vmatpush3.bf16.msra.mxu1 %v3286_v60 }
 0x96a   :  { %v2180_v55 = vmax.f32 %v2172_v54, 0.0  ;;  %3129 = vmatpush3.bf16.msra.mxu0 %v2184_v8  ;;  %3162 = vmatprep.subr.bf16.mxu1 %v3291_v25 }
 0x96b   :  { %v2186_v10 = vpack.c.bf16 %v2182_v46, %v2181_v27  ;;  %3130 = vmatprep.subr.bf16.mxu0 %v3291_v25 }
 0x96c   :  { %v2185_v17 = vpack.c.bf16 %v2180_v55, %v2179_v35 }
 0x96d   :  { %3163 = vmatpush3.bf16.msra.mxu1 %v3287_v49 }
 0x96e   :  { %3131 = vmatpush3.bf16.msra.mxu0 %v2185_v17  ;;  %3164 = vmatprep.subr.bf16.mxu1 %v3291_v25 }
 0x96f   :  { %3132 = vmatprep.subr.bf16.mxu0 %v3291_v25 }
 0x971   :  { %3165 = vmatpush3.bf16.msra.mxu1 %v3288_v38 }
 0x972   :  { %3133 = vmatpush3.bf16.msra.mxu0 %v2186_v10 }
 0x973   :  { %3138 = vmatprep.subr.bf16.mxu0 %v3291_v25 }
 0x975   :  { %3135 = vmatmul.mubr.msk.bf16.vlgmr.msra.gmra.mrb[76].mxu0 %vm952_vm7, %v672_v61 }
 0x976   :  { %3139 = vmatpush3.bf16.msra.mxu0 %v3277_v59  ;;  %3154 = vmatprep.mubr.msk.bf16.mxu0 %vm3293_vm3, %v3291_v25 }
 0x977   :  { %3140 = vmatprep.subr.bf16.mxu0 %v3291_v25 }
 0x97a   :  { %3141 = vmatpush3.bf16.msra.mxu0 %v3278_v6 }
 0x97b   :  { %3142 = vmatprep.subr.bf16.mxu0 %v3291_v25 }
 0x97e   :  { %3143 = vmatpush3.bf16.msra.mxu0 %v3279_v28 }
 0x97f   :  { %3144 = vmatprep.subr.bf16.mxu0 %v3291_v25 }
 0x982   :  { %3145 = vmatpush3.bf16.msra.mxu0 %v3280_v47 }
 0x983   :  { %3146 = vmatprep.subr.bf16.mxu0 %v3291_v25 }
 0x986   :  { %3147 = vmatpush3.bf16.msra.mxu0 %v3281_v3 }
 0x987   :  { %3148 = vmatprep.subr.bf16.mxu0 %v3291_v25 }
 0x98a   :  { %3149 = vmatpush3.bf16.msra.mxu0 %v3282_v45 }
 0x98b   :  { %3150 = vmatprep.subr.bf16.mxu0 %v3291_v25 }
 0x98e   :  { %3151 = vmatpush3.bf16.msra.mxu0 %v3283_v13 }
 0x98f   :  { %3152 = vmatprep.subr.bf16.mxu0 %v3291_v25  ;;  %v2703_v25 = vld [vmem:[%s4332_s4 + $0x10] ss:$0 sm:$0xff] }
 0x992   :  { %3153 = vmatpush3.bf16.msra.mxu0 %v3284_v20 }
 0xa48   :  { %v2224_v29 = vpop.f32.mrb[76].mxu0 }
 0xa49   :  { %v2238_v34 = vmul.f32 %v2687_v39, %v2224_v29  ;;  %v3136_v7 = vpop.f32.mrb[77].mxu0 }
 0xa4a   :  { %v2227_v1 = vpop.f32.mrb[78].mxu0 }
 0xa4b   :  { %v2247_v18 = vadd.f32 %v2689_v14, %v2238_v34  ;;  %v3137_v58 = vpop.f32.mrb[79].mxu0 }
 0xa4d   :  { %v2248_v26 = vpack.c.bf16 %v2247_v18, %v2247_v18 }
 0xa4f   :  { %3155 = vmatmul.mubr.bf16.vlgmr.msra.gmra.mrb[80].mxu0 %v2248_v26 }
 0xb22   :  { %v2355_v12 = vpop.f32.mrb[80].mxu0 }
 0xb23   :  { %v2356_v33 = vadd.f32 %v2691_v53, %v2355_v12  ;;  %v3156_v63 = vpop.f32.mrb[81].mxu0 }
 0xb24   :  { %v2358_v9 = vpop.f32.mrb[82].mxu0 }
 0xb25   :  { %v2361_v44 = vmax.f32 %v2356_v33, 0.0  ;;  %v3157_v15 = vpop.f32.mrb[83].mxu0 }
 0xb27   :  { %v2370_v41 = vmul.f32 %v2701_v52, %v2361_v44 }
 0xb29   :  { %v2379_v22 = vadd.f32 %v2703_v25, %v2370_v41 }
 0xb2b   :  { %v2380_v2 = vpack.c.bf16 %v2379_v22, %v2379_v22 }
 0xb2d   :  { %3167 = vmatmul.mubr.msk.bf16.vlgmr.msra.gmra.mrb[76].mxu1 %vm952_vm7, %v2380_v2 }
 0xc00   :  { %v2458_v16 = vpop.f32.mrb[76].mxu1 }
 0xc01   :  { %v2459_v43 = vadd.f32 %v2705_v31, %v2458_v16  ;;  %v3168_v23 = vpop.f32.mrb[77].mxu1 }
 0xc02   :  { %v2461_v50 = vpop.f32.mrb[78].mxu1 }
 0xc03   :  { %2464 = vst [vmem:[%s4334_s8] sm:$0xff] %v2459_v43  ;;  %v3169_v51 = vpop.f32.mrb[79].mxu1 }

</bundles_post_ra>
